<compile_context>
chip_gen: v6e
topology: v6e:2x2x1
jax: 0.10.0
libtpu: 0.0.40
codegen_flags: <defaults>
</compile_context>

<pallas_src>
import functools

import jax
import jax.numpy as jnp
from jax.experimental import pallas as pl
from jax.experimental.pallas import tpu as pltpu


def _gated_convt_kernel(x_ref, w_ref, b_ref, o_ref, *, K, Cin, Cout, d, OH, Wp):
    """One grid step = one batch sample.

    x_ref : (1, Cin, L)          zero-stuffed + padded input, rows flattened
                                 (L >= Hp*Wp + (K-1)*d, lane-aligned)
    w_ref : (2*Cout, K*K*Cin)    fused flipped weights, h rows then g rows
    b_ref : (2*Cout, 1)          fused biases
    o_ref : (1, Cout, OH*Wp)     gated output, "wide" rows (junk cols dropped in wrapper)
    """
    Lacc = OH * Wp
    acc = None
    # Static loop over kernel taps; each tap is ONE fused (h|g) MXU matmul:
    #   (2*Cout, Cin) @ (Cin, OH*Wp)   -- accumulator stays lane-dense.
    for ky in range(K):
        for kx in range(K):
            t = ky * K + kx
            off = ky * d * Wp + kx * d
            win = x_ref[0, :, off:off + Lacc]            # (Cin, Lacc) contiguous lane slice
            wt = w_ref[:, t * Cin:(t + 1) * Cin]         # (2*Cout, Cin)
            contrib = jnp.dot(wt, win, preferred_element_type=jnp.float32)
            acc = contrib if acc is None else acc + contrib

    acc = acc + b_ref[...]                               # bias epilogue: one dense VPU add
    h = acc[:Cout, :]
    g = acc[Cout:, :]
    gated = h * jax.nn.sigmoid(g)                        # (Cout, Lacc)
    o_ref[...] = gated.reshape(1, Cout, Lacc).astype(o_ref.dtype)


def gated_conv_transpose2d(x_nchw, wh, wg, bh, bg, *, stride, padding=0, dilation=1):
    """Forward pass of GatedConvTranspose2d (activation=None).

    x_nchw : (N, Cin, H, W)     float32, PyTorch layout (kept NCHW end-to-end)
    wh, wg : (Cin, Cout, K, K)  ConvTranspose2d weights (PyTorch layout)
    bh, bg : (Cout,)
    returns: (N, Cout, OH, OW)
    """
    N, Cin, H, W = x_nchw.shape
    Cout, K = wh.shape[1], wh.shape[2]
    s, p, d = stride, padding, dilation

    pad = d * (K - 1) - p
    assert pad >= 0, "this implementation requires dilation*(K-1) >= padding"
    OH = (H - 1) * s - 2 * p + d * (K - 1) + 1
    OW = (W - 1) * s - 2 * p + d * (K - 1) + 1
    Hd, Wd = (H - 1) * s + 1, (W - 1) * s + 1
    Hp, Wp = Hd + 2 * pad, Wd + 2 * pad
    assert OH == Hp - (K - 1) * d and OW == Wp - (K - 1) * d

    # ---- glue: zero-stuff + pad + flatten rows (no layout transposes of activations) ----
    xd = jnp.zeros((N, Cin, Hd, Wd), x_nchw.dtype).at[:, :, ::s, ::s].set(x_nchw)
    xp = jnp.pad(xd, ((0, 0), (0, 0), (pad, pad), (pad, pad)))        # (N, Cin, Hp, Wp)
    L = Hp * Wp + (K - 1) * d                 # last tap window overhangs by (K-1)*d
    L = ((L + 127) // 128) * 128              # lane-align flat length
    xflat = jnp.pad(xp.reshape(N, Cin, Hp * Wp),                      # contiguous -> free
                    ((0, 0), (0, 0), (0, L - Hp * Wp)))

    # fused, flipped, flattened weights: (2*Cout, K*K*Cin), h rows then g rows
    def to_flat(w):
        wf = w[:, :, ::-1, ::-1]                                      # flip spatial taps
        return jnp.transpose(wf, (1, 2, 3, 0)).reshape(Cout, K * K * Cin)

    w2 = jnp.concatenate([to_flat(wh), to_flat(wg)], axis=0)          # (2*Cout, K*K*Cin)
    b2 = jnp.concatenate([bh, bg], axis=0).reshape(2 * Cout, 1)       # (2*Cout, 1)

    Lacc = OH * Wp
    kernel = functools.partial(_gated_convt_kernel,
                               K=K, Cin=Cin, Cout=Cout, d=d, OH=OH, Wp=Wp)

    out_wide = pl.pallas_call(
        kernel,
        out_shape=jax.ShapeDtypeStruct((N, Cout, Lacc), x_nchw.dtype),
        grid_spec=pltpu.PrefetchScalarGridSpec(
            num_scalar_prefetch=0,
            grid=(N,),
            in_specs=[
                pl.BlockSpec((1, Cin, L), lambda n: (n, 0, 0)),
                pl.BlockSpec((2 * Cout, K * K * Cin), lambda n: (0, 0)),
                pl.BlockSpec((2 * Cout, 1), lambda n: (0, 0)),
            ],
            out_specs=pl.BlockSpec((1, Cout, Lacc), lambda n: (n, 0, 0)),
        ),
        compiler_params=pltpu.CompilerParams(dimension_semantics=("parallel",)),
    )(xflat, w2, b2)

    # free contiguous reshape + one narrow slice dropping the (K-1)*d junk columns per row
    return out_wide.reshape(N, Cout, OH, Wp)[:, :, :, :OW]


# ---- plain-JAX reference (scatter formulation of ConvTranspose2d) ----
def _conv_transpose_ref(x, w, b, s, p, d):
    N, Cin, H, W = x.shape
    Cout, K = w.shape[1], w.shape[2]
    OH = (H - 1) * s - 2 * p + d * (K - 1) + 1
    OW = (W - 1) * s - 2 * p + d * (K - 1) + 1
    out = jnp.zeros((N, Cout, OH + 2 * p, OW + 2 * p), jnp.float32)
    for ky in range(K):
        for kx in range(K):
            contrib = jnp.einsum('nchw,cd->ndhw', x, w[:, :, ky, kx])
            out = out.at[:, :,
                         ky * d: ky * d + (H - 1) * s + 1: s,
                         kx * d: kx * d + (W - 1) * s + 1: s].add(contrib)
    return out[:, :, p:p + OH, p:p + OW] + b.reshape(1, Cout, 1, 1)


def _gated_ref(x, wh, wg, bh, bg, s, p, d):
    h = _conv_transpose_ref(x, wh, bh, s, p, d)
    g = jax.nn.sigmoid(_conv_transpose_ref(x, wg, bg, s, p, d))
    return h * g


if __name__ == "__main__":
    # Module config: GatedConvTranspose2d(input_channels=4, output_channels=8,
    #                                     kernel_size=3, stride=2, padding=1)
    N, Cin, Cout, H, W, K = 2, 4, 8, 16, 16, 3
    stride, padding, dilation = 2, 1, 1

    key = jax.random.PRNGKey(0)
    kx, kwh, kwg, kbh, kbg = jax.random.split(key, 5)
    x = jax.random.normal(kx, (N, Cin, H, W), dtype=jnp.float32)
    wh = jax.random.normal(kwh, (Cin, Cout, K, K), dtype=jnp.float32) * 0.1
    wg = jax.random.normal(kwg, (Cin, Cout, K, K), dtype=jnp.float32) * 0.1
    bh = jax.random.normal(kbh, (Cout,), dtype=jnp.float32) * 0.1
    bg = jax.random.normal(kbg, (Cout,), dtype=jnp.float32) * 0.1

    out = gated_conv_transpose2d(
        x, wh, wg, bh, bg, stride=stride, padding=padding, dilation=dilation)
    out = jax.block_until_ready(out)

    ref = _gated_ref(x, wh, wg, bh, bg, stride, padding, dilation)
    assert out.shape == ref.shape, (out.shape, ref.shape)
    assert jnp.allclose(out, ref, rtol=1e-4, atol=1e-4), float(jnp.max(jnp.abs(out - ref)))

    print("KERNEL_OK")
</pallas_src>

<mosaic_0001>
module attributes {stable_mosaic.version = 11 : i64} {
  func.func @_gated_convt_kernel(%arg0: i32, %arg1: memref<1x4x1152xf32, #tpu.memory_space<vmem>>, %arg2: memref<16x36xf32, #tpu.memory_space<vmem>>, %arg3: memref<16x1xf32, #tpu.memory_space<vmem>>, %arg4: memref<1x8x1023xf32, #tpu.memory_space<vmem>>) attributes {dimension_semantics = [#tpu.dimension_semantics<parallel>], iteration_bounds = array<i64: 2>, scalar_prefetch = 0 : i64, scratch_operands = 0 : i64, tpu.core_type = #tpu.core_type<tc>, window_params = [{transform_indices = @transform_0, window_bounds = array<i64: 1, 4, 1152>}, {pipeline_mode = #tpu.pipeline_mode<synchronous>, transform_indices = @transform_1, window_bounds = array<i64: 16, 36>}, {pipeline_mode = #tpu.pipeline_mode<synchronous>, transform_indices = @transform_2, window_bounds = array<i64: 16, 1>}, {transform_indices = @transform_3, window_bounds = array<i64: 1, 8, 1023>}]} {
    %c0 = arith.constant 0 : index
    %c0_0 = arith.constant 0 : index
    %c0_1 = arith.constant 0 : index
    %0 = vector.load %arg1[%c0, %c0_0, %c0_1] : memref<1x4x1152xf32, #tpu.memory_space<vmem>>, vector<1x4x1023xf32>
    %1 = vector.shape_cast %0 : vector<1x4x1023xf32> to vector<4x1023xf32>
    %c0_2 = arith.constant 0 : index
    %c0_3 = arith.constant 0 : index
    %2 = vector.load %arg2[%c0_2, %c0_3] : memref<16x36xf32, #tpu.memory_space<vmem>>, vector<16x4xf32>
    %cst = arith.constant dense<0.000000e+00> : vector<16x1023xf32>
    %3 = tpu.matmul %2, %1, %cst {dimension_numbers = #tpu.dot_dimension_numbers<[1], [0], [0], [1], [0, 0, 1, 1], [], []>} : vector<16x4xf32>, vector<4x1023xf32>, vector<16x1023xf32> -> vector<16x1023xf32>
    %c0_4 = arith.constant 0 : index
    %c0_5 = arith.constant 0 : index
    %c1 = arith.constant 1 : index
    %4 = vector.load %arg1[%c0_4, %c0_5, %c1] : memref<1x4x1152xf32, #tpu.memory_space<vmem>>, vector<1x4x1023xf32>
    %5 = vector.shape_cast %4 : vector<1x4x1023xf32> to vector<4x1023xf32>
    %c0_6 = arith.constant 0 : index
    %c4 = arith.constant 4 : index
    %6 = vector.load %arg2[%c0_6, %c4] : memref<16x36xf32, #tpu.memory_space<vmem>>, vector<16x4xf32>
    %cst_7 = arith.constant dense<0.000000e+00> : vector<16x1023xf32>
    %7 = tpu.matmul %6, %5, %cst_7 {dimension_numbers = #tpu.dot_dimension_numbers<[1], [0], [0], [1], [0, 0, 1, 1], [], []>} : vector<16x4xf32>, vector<4x1023xf32>, vector<16x1023xf32> -> vector<16x1023xf32>
    %8 = arith.addf %3, %7 : vector<16x1023xf32>
    %c0_8 = arith.constant 0 : index
    %c0_9 = arith.constant 0 : index
    %c2 = arith.constant 2 : index
    %9 = vector.load %arg1[%c0_8, %c0_9, %c2] : memref<1x4x1152xf32, #tpu.memory_space<vmem>>, vector<1x4x1023xf32>
    %10 = vector.shape_cast %9 : vector<1x4x1023xf32> to vector<4x1023xf32>
    %c0_10 = arith.constant 0 : index
    %c8 = arith.constant 8 : index
    %11 = vector.load %arg2[%c0_10, %c8] : memref<16x36xf32, #tpu.memory_space<vmem>>, vector<16x4xf32>
    %cst_11 = arith.constant dense<0.000000e+00> : vector<16x1023xf32>
    %12 = tpu.matmul %11, %10, %cst_11 {dimension_numbers = #tpu.dot_dimension_numbers<[1], [0], [0], [1], [0, 0, 1, 1], [], []>} : vector<16x4xf32>, vector<4x1023xf32>, vector<16x1023xf32> -> vector<16x1023xf32>
    %13 = arith.addf %8, %12 : vector<16x1023xf32>
    %c0_12 = arith.constant 0 : index
    %c0_13 = arith.constant 0 : index
    %c33 = arith.constant 33 : index
    %14 = vector.load %arg1[%c0_12, %c0_13, %c33] : memref<1x4x1152xf32, #tpu.memory_space<vmem>>, vector<1x4x1023xf32>
    %15 = vector.shape_cast %14 : vector<1x4x1023xf32> to vector<4x1023xf32>
    %c0_14 = arith.constant 0 : index
    %c12 = arith.constant 12 : index
    %16 = vector.load %arg2[%c0_14, %c12] : memref<16x36xf32, #tpu.memory_space<vmem>>, vector<16x4xf32>
    %cst_15 = arith.constant dense<0.000000e+00> : vector<16x1023xf32>
    %17 = tpu.matmul %16, %15, %cst_15 {dimension_numbers = #tpu.dot_dimension_numbers<[1], [0], [0], [1], [0, 0, 1, 1], [], []>} : vector<16x4xf32>, vector<4x1023xf32>, vector<16x1023xf32> -> vector<16x1023xf32>
    %18 = arith.addf %13, %17 : vector<16x1023xf32>
    %c0_16 = arith.constant 0 : index
    %c0_17 = arith.constant 0 : index
    %c34 = arith.constant 34 : index
    %19 = vector.load %arg1[%c0_16, %c0_17, %c34] : memref<1x4x1152xf32, #tpu.memory_space<vmem>>, vector<1x4x1023xf32>
    %20 = vector.shape_cast %19 : vector<1x4x1023xf32> to vector<4x1023xf32>
    %c0_18 = arith.constant 0 : index
    %c16 = arith.constant 16 : index
    %21 = vector.load %arg2[%c0_18, %c16] : memref<16x36xf32, #tpu.memory_space<vmem>>, vector<16x4xf32>
    %cst_19 = arith.constant dense<0.000000e+00> : vector<16x1023xf32>
    %22 = tpu.matmul %21, %20, %cst_19 {dimension_numbers = #tpu.dot_dimension_numbers<[1], [0], [0], [1], [0, 0, 1, 1], [], []>} : vector<16x4xf32>, vector<4x1023xf32>, vector<16x1023xf32> -> vector<16x1023xf32>
    %23 = arith.addf %18, %22 : vector<16x1023xf32>
    %c0_20 = arith.constant 0 : index
    %c0_21 = arith.constant 0 : index
    %c35 = arith.constant 35 : index
    %24 = vector.load %arg1[%c0_20, %c0_21, %c35] : memref<1x4x1152xf32, #tpu.memory_space<vmem>>, vector<1x4x1023xf32>
    %25 = vector.shape_cast %24 : vector<1x4x1023xf32> to vector<4x1023xf32>
    %c0_22 = arith.constant 0 : index
    %c20 = arith.constant 20 : index
    %26 = vector.load %arg2[%c0_22, %c20] : memref<16x36xf32, #tpu.memory_space<vmem>>, vector<16x4xf32>
    %cst_23 = arith.constant dense<0.000000e+00> : vector<16x1023xf32>
    %27 = tpu.matmul %26, %25, %cst_23 {dimension_numbers = #tpu.dot_dimension_numbers<[1], [0], [0], [1], [0, 0, 1, 1], [], []>} : vector<16x4xf32>, vector<4x1023xf32>, vector<16x1023xf32> -> vector<16x1023xf32>
    %28 = arith.addf %23, %27 : vector<16x1023xf32>
    %c0_24 = arith.constant 0 : index
    %c0_25 = arith.constant 0 : index
    %c66 = arith.constant 66 : index
    %29 = vector.load %arg1[%c0_24, %c0_25, %c66] : memref<1x4x1152xf32, #tpu.memory_space<vmem>>, vector<1x4x1023xf32>
    %30 = vector.shape_cast %29 : vector<1x4x1023xf32> to vector<4x1023xf32>
    %c0_26 = arith.constant 0 : index
    %c24 = arith.constant 24 : index
    %31 = vector.load %arg2[%c0_26, %c24] : memref<16x36xf32, #tpu.memory_space<vmem>>, vector<16x4xf32>
    %cst_27 = arith.constant dense<0.000000e+00> : vector<16x1023xf32>
    %32 = tpu.matmul %31, %30, %cst_27 {dimension_numbers = #tpu.dot_dimension_numbers<[1], [0], [0], [1], [0, 0, 1, 1], [], []>} : vector<16x4xf32>, vector<4x1023xf32>, vector<16x1023xf32> -> vector<16x1023xf32>
    %33 = arith.addf %28, %32 : vector<16x1023xf32>
    %c0_28 = arith.constant 0 : index
    %c0_29 = arith.constant 0 : index
    %c67 = arith.constant 67 : index
    %34 = vector.load %arg1[%c0_28, %c0_29, %c67] : memref<1x4x1152xf32, #tpu.memory_space<vmem>>, vector<1x4x1023xf32>
    %35 = vector.shape_cast %34 : vector<1x4x1023xf32> to vector<4x1023xf32>
    %c0_30 = arith.constant 0 : index
    %c28 = arith.constant 28 : index
    %36 = vector.load %arg2[%c0_30, %c28] : memref<16x36xf32, #tpu.memory_space<vmem>>, vector<16x4xf32>
    %cst_31 = arith.constant dense<0.000000e+00> : vector<16x1023xf32>
    %37 = tpu.matmul %36, %35, %cst_31 {dimension_numbers = #tpu.dot_dimension_numbers<[1], [0], [0], [1], [0, 0, 1, 1], [], []>} : vector<16x4xf32>, vector<4x1023xf32>, vector<16x1023xf32> -> vector<16x1023xf32>
    %38 = arith.addf %33, %37 : vector<16x1023xf32>
    %c0_32 = arith.constant 0 : index
    %c0_33 = arith.constant 0 : index
    %c68 = arith.constant 68 : index
    %39 = vector.load %arg1[%c0_32, %c0_33, %c68] : memref<1x4x1152xf32, #tpu.memory_space<vmem>>, vector<1x4x1023xf32>
    %40 = vector.shape_cast %39 : vector<1x4x1023xf32> to vector<4x1023xf32>
    %c0_34 = arith.constant 0 : index
    %c32 = arith.constant 32 : index
    %41 = vector.load %arg2[%c0_34, %c32] : memref<16x36xf32, #tpu.memory_space<vmem>>, vector<16x4xf32>
    %cst_35 = arith.constant dense<0.000000e+00> : vector<16x1023xf32>
    %42 = tpu.matmul %41, %40, %cst_35 {dimension_numbers = #tpu.dot_dimension_numbers<[1], [0], [0], [1], [0, 0, 1, 1], [], []>} : vector<16x4xf32>, vector<4x1023xf32>, vector<16x1023xf32> -> vector<16x1023xf32>
    %43 = arith.addf %38, %42 : vector<16x1023xf32>
    %c0_36 = arith.constant 0 : index
    %c0_37 = arith.constant 0 : index
    %44 = vector.load %arg3[%c0_36, %c0_37] : memref<16x1xf32, #tpu.memory_space<vmem>>, vector<16x1xf32>
    %45 = vector.broadcast %44 : vector<16x1xf32> to vector<16x1023xf32>
    %46 = arith.addf %43, %45 : vector<16x1023xf32>
    %47 = vector.extract_strided_slice %46 {offsets = [0, 0], sizes = [8, 1023], strides = [1, 1]} : vector<16x1023xf32> to vector<8x1023xf32>
    %48 = vector.extract_strided_slice %46 {offsets = [8, 0], sizes = [8, 1023], strides = [1, 1]} : vector<16x1023xf32> to vector<8x1023xf32>
    %49 = arith.negf %48 : vector<8x1023xf32>
    %50 = math.exp %49 : vector<8x1023xf32>
    %cst_38 = arith.constant 1.000000e+00 : f32
    %51 = vector.broadcast %cst_38 : f32 to vector<8x1023xf32>
    %52 = arith.addf %51, %50 : vector<8x1023xf32>
    %53 = arith.divf %51, %52 : vector<8x1023xf32>
    %54 = arith.mulf %47, %53 : vector<8x1023xf32>
    %55 = vector.shape_cast %54 : vector<8x1023xf32> to vector<1x8x1023xf32>
    %c0_39 = arith.constant 0 : index
    %c0_40 = arith.constant 0 : index
    %c0_41 = arith.constant 0 : index
    %56 = vector.load %arg4[%c0_39, %c0_40, %c0_41] : memref<1x8x1023xf32, #tpu.memory_space<vmem>>, vector<1x8x1023xf32>
    tpu.vector_store %arg4[%c0_39, %c0_40, %c0_41], %55 {strides = array<i32>} : memref<1x8x1023xf32, #tpu.memory_space<vmem>>, vector<1x8x1023xf32>,
    return
  }
  func.func @transform_0(%arg0: i32) -> (i32, i32, i32) {
    %c0_i32 = arith.constant 0 : i32
    %c0_i32_0 = arith.constant 0 : i32
    %c0_i32_1 = arith.constant 0 : i32
    return %arg0, %c0_i32, %c0_i32_0 : i32, i32, i32
  }
  func.func @transform_1(%arg0: i32) -> (i32, i32) {
    %c0_i32 = arith.constant 0 : i32
    %c0_i32_0 = arith.constant 0 : i32
    %c0_i32_1 = arith.constant 0 : i32
    return %c0_i32, %c0_i32_0 : i32, i32
  }
  func.func @transform_2(%arg0: i32) -> (i32, i32) {
    %c0_i32 = arith.constant 0 : i32
    %c0_i32_0 = arith.constant 0 : i32
    %c0_i32_1 = arith.constant 0 : i32
    return %c0_i32, %c0_i32_0 : i32, i32
  }
  func.func @transform_3(%arg0: i32) -> (i32, i32, i32) {
    %c0_i32 = arith.constant 0 : i32
    %c0_i32_0 = arith.constant 0 : i32
    %c0_i32_1 = arith.constant 0 : i32
    return %arg0, %c0_i32, %c0_i32_0 : i32, i32, i32
  }
}

</mosaic_0001>

<bundles_post_ra>
// kernel: tpu_custom_call.1
= control target key start
LH: loop header
LB: loop body
LE: loop exit
PB: predicated region body
PF: predicated region fallthrough
CT: control target
= control target key end

     0   :  { %8 = vsyncpa [#allocation3], 0  ;;  %s5002_s0 = inlined_call_operand.hbm [shape: f32[2,4,1152], index: 0, kind: input, shape index: {}]   ;;  %s5003_s1 = inlined_call_operand.vmem [shape: f32[16,36], index: 1, kind: input, shape index: {}]   ;;  %s5004_s2 = inlined_call_operand.vmem [shape: f32[16,1], index: 2, kind: input, shape index: {}]   ;;  %s5005_s3 = inlined_call_operand.hbm [shape: f32[2,8,1023], index: 3, kind: output, shape index: {}]  }
   0x1   :  { %10 = vsyncpa [#allocation3 + $0x1], 0 }
   0x2   :  { %11 = vsyncpa [#allocation4], 0 }
   0x3   :  { %13 = vsyncpa [#allocation4 + $0x1], 0  ;;  %s4220_s12 = smov 0   ;;  %s4222_s13 = smov 0  }
   0x4   :  { %s4224_s14 = smov 0   ;;  %s4226_s15 = smov 0  }
   0x5 LB: > { %s4241_s16 = sadd.s32 4294967295, %s4178_s15   ;;  %s3817_s17 = sadd.s32 4294967294, %s4178_s15   ;;  %s4178_s15 = sphi %s4226_s15, %s5029_s15   ;;  %s4174_s14 = sphi %s4224_s14, %s5028_s14   ;;  %s4170_s13 = sphi %s4222_s13, %s5027_s13   ;;  %s4166_s12 = sphi %s4220_s12, %s5026_s12  }
   0x6   : > { %s4245_s18 = sadd.s32 1, %s4178_s15   ;;  %s26_s19 = sadd.s32 1, %s4174_s14 }
   0x7   : > { %s23_s20 = ssub.s32 %s4178_s15, %s4245_s18  ;;  %p33_p0 = scmp.ne.s32.totalorder %s4174_s14, %s4170_s13 }
   0x8   : > { %p24_p1 = scmp.eq.s32.totalorder %s23_s20, 0  ;;  %p34_p2 = scmp.eq.s32.totalorder %s4178_s15, 0 }
   0x9   : > { %p39_p3 = scmp.ne.s32.totalorder %s4170_s13, %s4166_s12  ;;  %p40_p4 = scmp.eq.s32.totalorder %s4241_s16, 0 }
   0xa   : > { %s4257_s21 = scalar_select %p24_p1, %s4174_s14, %s26_s19  }
   0xb   : > { %p35_p5 = por %p34_p2, %p33_p0  ;;  %p4259_p6 = por %p40_p4, %p39_p3 }
   0xc   : > { %p105_p7 = scmp.eq.s32.totalorder %s4241_s16, 1  ;;  %p111_p8 = scmp.eq.s32.totalorder %s3817_s17, 1 }
   0xd   : > { %s5008_s22 = scalar_select %p4259_p6, 1, 0 }
   0xe   : > { %p3996_p10 = scmp.lt.s32.totalorder %s4178_s15, 2  ;;  %p4266_p11 = por %p105_p7, %p33_p0 }
   0xf   : > { %p4270_p12 = por %p111_p8, %p39_p3  ;;  %s137_s25 = sand.u32 1, %s4174_s14  }
  0x10   : > { %s5009_s23 = scalar_select %p4266_p11, 1, 0 }
  0x11   : > { %s5010_s24 = scalar_select %p4270_p12, 1, 0 }
  0x12   : > { %s3982_s26 = smul.u32 576, %s4178_s15  ;;  %p4281_p13 = pnand %p3996_p10, %p35_p5 }
  0x13   : > { %s3981_s27 = smul.u32 36, %s137_s25  ;;  %s138_s7 = scalar_lea.sflag [#allocation3], %s137_s25 }
  0x14   : > { %s4279_s30 = scalar_lea.hbm %s5002_s0, %s3982_s26  ;;  %p4088_p3 = pneg %p4281_p13 }
  0x15   : > { %s141_s5 = scalar_lea.vmem [#allocation2], %s3981_s27  ;;  %s4086_s8 = scalar_lea.hbm %s4279_s30, 576 }
  0x16   : > { %s149_s6 = sshll.u32 %s141_s5, 4  ;;  %p4087_p2 = scmp.ne.s32.totalorder %s4279_s30, %s4086_s8  ;;  %s150_s6 = int_to_ptr.vmem [resolvable:$true] %s149_s6 }
  0x17   : > { %s4091_s11 = scalar_lea.hbm %s5002_s0, 1152  ;;  %p4092_p5 = scmp.lt.s32.totalorder %s4279_s30, %s5002_s0 }
  0x18   : > { %p4089_p4 = pnand %p4088_p3, %p4087_p2  ;;  %p4093_p8 = scmp.lt.s32.totalorder %s4091_s11, %s4086_s8 }
  0x1a   : > { %p4090_p7 = pneg %p4089_p4  ;;  %p4094_p10 = por %p4093_p8, %p4092_p5 }
  0x1c   : > { %p4095_p9 = pnand %p4094_p10, %p4090_p7 }
  0x1e   : > { %4098 = shalt.err (!%p4095_p9)
}
  0x1f   : > { %s4099_s20 = scalar_lea.vmem %s150_s6, 576  ;;  %s4180_s25 = smov [#allocation2]  }
  0x20   : > { %p4100_p0 = scmp.ne.s32.totalorder %s150_s6, %s4099_s20  ;;  %s4104_s26 = sshll.u32 %s4180_s25, 4  ;;  %s4105_s26 = int_to_ptr.vmem [resolvable:$false] %s4104_s26 }
  0x21   : > { %s4106_s27 = scalar_lea.vmem %s4105_s26, 1152  ;;  %p4107_p2 = scmp.lt.s32.totalorder %s150_s6, %s4105_s26 }
  0x22   : > { %p4102_p1 = pnand %p4100_p0, %p4088_p3  ;;  %p4108_p4 = scmp.lt.s32.totalorder %s4106_s27, %s4099_s20 }
  0x24   : > { %p4103_p12 = pneg %p4102_p1  ;;  %p4109_p11 = por %p4108_p4, %p4107_p2 }
  0x26   : > { %p4110_p6 = pnand %p4109_p11, %p4103_p12 }
  0x28   : > { %4113 = shalt.err (!%p4110_p6)
}
  0x29   : > { %3991 = dma.hbm_to_vmem [thread:$0]  (!%p4281_p13), %s4279_s30, 576, %s150_s6, %s138_s7  }
  0x2a   : > { %p5012_p9 = scmp.lt.s32.totalorder %s4178_s15, 3  ;;  %p5013_p7 = scmp.ge.s32.totalorder %s4178_s15, 1 }
  0x2c   : > { %p155_p5 = pnand %p5013_p7, %p5012_p9 }
  0x2e   : > { %158 = sbr.rel (%p155_p5) target bundleno = 603 (0x25b), region = 32 }
  0x33   : > { %s4306_s28 = sand.u32 1, %s4170_s13   ;;  %p5014_p6 = scmp.ne.s32.totalorder %s5008_s22, 0 }
  0x34   : > { %s3983_s29 = smul.u32 36, %s4306_s28  ;;  %s161_s5 = scalar_lea.sflag [#allocation3], %s4306_s28 }
  0x36   : > { %s4310_s8 = scalar_lea.vmem [#allocation2], %s3983_s29 }
  0x37   : > { %4157 = dma.done.wait (%p5014_p6), %s161_s5, 576  }
  0x38   : > { %4159 = vsyncadd (%p5014_p6), %s161_s5, 4294966720  ;;  %v4181_v0 = vmov 0.0   ;;  %v4319_v1 = vld [vmem:[%s4310_s8 + $0x10] sm:$0xff]  ;;  %v4322_v2 = vld [vmem:[%s4310_s8 + $0x8] sm:$0xff]  ;;  %s4182_s30 = smov 127   ;;  %s4183_s6 = smov 124  }
  0x39   : > { %317 = vmatprep.mubr.f32.mxu0 %v4181_v0  ;;  %394 = vmatprep.mubr.f32.mxu1 %v4181_v0  ;;  %v4329_v3 = vld [vmem:[%s5003_s1] sm:$0xff]  ;;  %v4338_v5 = vcombine.high %v4322_v2, %v4322_v2  ;;  %v4348_v7 = vcombine.high %v4319_v1, %v4319_v1  ;;  %v4353_v8 = vld [vmem:[%s5003_s1 + $0x8] sm:$0xff]  ;;  %s4184_s10 = smov 126   ;;  %s4185_s11 = smov 120   ;;  %vm223_vm0 = vcmask 1039360   ;;  %vm236_vm1 = vcmask 1043456  }
  0x3a   : > { %215 = vrot.lane.b32.xlu1 %v4319_v1, %s4182_s30  ;;  %211 = vrot.lane.b32.xlu0 %v4322_v2, %s4182_s30  ;;  %v4332_v4 = vld [vmem:[%s4310_s8] sm:$0xff]  ;;  %v4356_v9 = vld [vmem:[%s4310_s8 + $0x18] sm:$0xff]  ;;  %s4186_s17 = smov 95   ;;  %s4187_s19 = smov 116   ;;  %vm231_vm2 = vcmask 31744   ;;  %vm929_vm3 = vcmask 1031168  }
  0x3b   : > { %v4342_v6 = vcombine.high %v4332_v4, %v4332_v4  ;;  %v4362_v10 = vcombine.high %v4356_v9, %v4356_v9  ;;  %v893_v11 = vld [vmem:[%s4310_s8 + $0x20] sm:$0xf]  ;;  %s4188_s20 = smov 94   ;;  %s4189_s25 = smov 112   ;;  %vm1322_vm4 = vcmask 777216   ;;  %vm1715_vm5 = vcmask 769024  }
  0x3c   : > { %v1286_v12 = vld [vmem:[%s4310_s8 + $0x20] sm:$0xf]  ;;  %s4190_s26 = smov 93   ;;  %s4191_s27 = smov 108   ;;  %vm2108_vm6 = vcmask 760832   ;;  %vm2501_vm7 = vcmask 506880  }
  0x3d   : > { %v1679_v13 = vld [vmem:[%s4310_s8 + $0x20] sm:$0xf]  ;;  %s4192_s29 = smov 62   ;;  %s4193_s5 = smov 104   ;;  %vm2894_vm8 = vcmask 498688   ;;  %vm3287_vm9 = vcmask 490496  }
  0x3e   : > { %195 = vrot.lane.b32.xlu1 %v4329_v3, %s4183_s6  ;;  %207 = vrot.lane.b32.xlu0 %v4332_v4, %s4182_s30  ;;  %v2072_v14 = vld [vmem:[%s4310_s8 + $0x20] sm:$0xf]  ;;  %s4195_s22 = smov 100   ;;  %s4196_s4 = smov 60  }
  0x3f   : > { %v2465_v27 = vld [vmem:[%s4310_s8 + $0x20] sm:$0xf]  ;;  %p5023_p12 = scmp.ne.s32.totalorder %s5009_s23, 0 }
  0x40   : > { %v2858_v43 = vld [vmem:[%s4310_s8 + $0x20] sm:$0xf] }
  0x42   : > { %213 = vrot.lane.b32.xlu1 %v4338_v5, %s4182_s30  ;;  %209 = vrot.lane.b32.xlu0 %v4342_v6, %s4182_s30 }
  0x46   : > { %217 = vrot.lane.b32.xlu1 %v4348_v7, %s4182_s30  ;;  %197 = vrot.lane.b32.xlu0 %v4353_v8, %s4183_s6  ;;  %s4197_s6 = smov 96  }
  0x4a   : > { %221 = vrot.lane.b32.xlu1 %v4362_v10, %s4182_s30  ;;  %219 = vrot.lane.b32.xlu0 %v4356_v9, %s4182_s30  ;;  %s4194_s30 = smov 61  }
  0x4e   : > { %915 = vrot.lane.b32.xlu1 %v4322_v2, %s4184_s10  ;;  %913 = vrot.lane.b32.xlu0 %v4342_v6, %s4184_s10 }
  0x52   : > { %919 = vrot.lane.b32.xlu1 %v4319_v1, %s4184_s10  ;;  %917 = vrot.lane.b32.xlu0 %v4338_v5, %s4184_s10 }
  0x56   : > { %898 = vrot.lane.b32.xlu1 %v4329_v3, %s4185_s11  ;;  %911 = vrot.lane.b32.xlu0 %v4332_v4, %s4184_s10 }
  0x5a   : > { %921 = vrot.lane.b32.xlu1 %v4348_v7, %s4184_s10  ;;  %900 = vrot.lane.b32.xlu0 %v4353_v8, %s4185_s11  ;;  %s3822_s11 = sshll.u32 %s4306_s28, 6 }
  0x5e   : > { %925 = vrot.lane.b32.xlu1 %v4362_v10, %s4184_s10  ;;  %923 = vrot.lane.b32.xlu0 %v4356_v9, %s4184_s10 }
  0x62   : > { %1306 = vrot.lane.b32.xlu1 %v4342_v6, %s4186_s17  ;;  %927 = vrot.lane.b32.xlu0 %v893_v11, %s4184_s10 }
  0x66   : > { %1310 = vrot.lane.b32.xlu1 %v4338_v5, %s4186_s17  ;;  %1308 = vrot.lane.b32.xlu0 %v4322_v2, %s4186_s17 }
  0x6a   : > { %1304 = vrot.lane.b32.xlu1 %v4332_v4, %s4186_s17  ;;  %1312 = vrot.lane.b32.xlu0 %v4319_v1, %s4186_s17 }
  0x6e   : > { %1293 = vrot.lane.b32.xlu1 %v4353_v8, %s4187_s19  ;;  %1291 = vrot.lane.b32.xlu0 %v4329_v3, %s4187_s19  ;;  %s3980_s19 = sshll.u32 %s4241_s16, 10  ;;  %s4199_s16 = smov [#allocation5]  }
  0x72   : > { %1316 = vrot.lane.b32.xlu1 %v4356_v9, %s4186_s17  ;;  %1314 = vrot.lane.b32.xlu0 %v4348_v7, %s4186_s17 }
  0x76   : > { %1320 = vrot.lane.b32.xlu1 %v1286_v12, %s4186_s17  ;;  %1318 = vrot.lane.b32.xlu0 %v4362_v10, %s4186_s17  ;;  %s4943_s17 = scalar_lea.vmem [#allocation5], %s3822_s11 }
  0x7a   : > { %1701 = vrot.lane.b32.xlu1 %v4322_v2, %s4188_s20  ;;  %1699 = vrot.lane.b32.xlu0 %v4342_v6, %s4188_s20 }
  0x7e   : > { %1705 = vrot.lane.b32.xlu1 %v4319_v1, %s4188_s20  ;;  %1703 = vrot.lane.b32.xlu0 %v4338_v5, %s4188_s20 }
  0x82   : > { %1684 = vrot.lane.b32.xlu1 %v4329_v3, %s4189_s25  ;;  %1697 = vrot.lane.b32.xlu0 %v4332_v4, %s4188_s20 }
  0x86   : > { %1707 = vrot.lane.b32.xlu1 %v4348_v7, %s4188_s20  ;;  %1686 = vrot.lane.b32.xlu0 %v4353_v8, %s4189_s25 }
  0x8a   : > { %1711 = vrot.lane.b32.xlu1 %v4362_v10, %s4188_s20  ;;  %1709 = vrot.lane.b32.xlu0 %v4356_v9, %s4188_s20 }
  0x8e   : > { %2092 = vrot.lane.b32.xlu1 %v4342_v6, %s4190_s26  ;;  %1713 = vrot.lane.b32.xlu0 %v1679_v13, %s4188_s20  ;;  %s3747_s20 = sshll.u32 %s4943_s17, 4  ;;  %s3748_s20 = int_to_ptr.vmem [resolvable:$true] %s3747_s20 }
  0x92   : > { %2096 = vrot.lane.b32.xlu1 %v4338_v5, %s4190_s26  ;;  %2094 = vrot.lane.b32.xlu0 %v4322_v2, %s4190_s26 }
  0x96   : > { %2090 = vrot.lane.b32.xlu1 %v4332_v4, %s4190_s26  ;;  %2098 = vrot.lane.b32.xlu0 %v4319_v1, %s4190_s26 }
  0x9a   : > { %2079 = vrot.lane.b32.xlu1 %v4353_v8, %s4191_s27  ;;  %2077 = vrot.lane.b32.xlu0 %v4329_v3, %s4191_s27  ;;  %s3745_s27 = scalar_lea.hbm %s5005_s3, %s3980_s19 }
  0x9e   : > { %2102 = vrot.lane.b32.xlu1 %v4356_v9, %s4190_s26  ;;  %2100 = vrot.lane.b32.xlu0 %v4348_v7, %s4190_s26 }
  0xa2   : > { %2106 = vrot.lane.b32.xlu1 %v2072_v14, %s4190_s26  ;;  %2104 = vrot.lane.b32.xlu0 %v4362_v10, %s4190_s26 }
  0xa6   : > { %2487 = vrot.lane.b32.xlu1 %v4322_v2, %s4192_s29  ;;  %2485 = vrot.lane.b32.xlu0 %v4342_v6, %s4192_s29 }
  0xaa   : > { %2491 = vrot.lane.b32.xlu1 %v4319_v1, %s4192_s29  ;;  %2489 = vrot.lane.b32.xlu0 %v4338_v5, %s4192_s29 }
  0xac   : > { %v216_v15 = vpop.permute.xlu1 %215  ;;  %v212_v16 = vpop.permute.xlu0 %211 }
  0xae   : > { %2470 = vrot.lane.b32.xlu1 %v4329_v3, %s4193_s5  ;;  %2483 = vrot.lane.b32.xlu0 %v4332_v4, %s4192_s29 }
  0xb0   : > { %v196_v17 = vpop.permute.xlu1 %195  ;;  %v208_v18 = vpop.permute.xlu0 %207 }
  0xb2   : > { %2493 = vrot.lane.b32.xlu1 %v4348_v7, %s4192_s29  ;;  %2472 = vrot.lane.b32.xlu0 %v4353_v8, %s4193_s5  ;;  %s4114_s5 = scalar_lea.vmem %s3748_s20, 1024 }
  0xb3   : > { %p4115_p11 = scmp.ne.s32.totalorder %s3748_s20, %s4114_s5 }
  0xb4   : > { %v214_v19 = vpop.permute.xlu1 %213  ;;  %v210_v20 = vpop.permute.xlu0 %209 }
  0xb5   : > { %v227_v21 = vsel %vm223_vm0, %v214_v19, %v216_v15  ;;  %v225_v22 = vsel %vm223_vm0, %v210_v20, %v212_v16  ;;  %v224_v23 = vsel %vm223_vm0, %v208_v18, %v210_v20  ;;  %v226_v24 = vsel %vm223_vm0, %v212_v16, %v214_v19  ;;  %p4116_p13 = pnand %p4115_p11, %p5023_p12 }
  0xb6   : > { %2497 = vrot.lane.b32.xlu1 %v4362_v10, %s4192_s29  ;;  %3827 = vmatprep.subr.msk.mxu1 %vm236_vm1, %v227_v21 }
  0xb7   : > { %2495 = vrot.lane.b32.xlu0 %v4356_v9, %s4192_s29  ;;  %3823 = vmatprep.subr.msk.mxu0 %vm236_vm1, %v225_v22  ;;  %p4117_p0 = pneg %p4116_p13 }
  0xb8   : > { %3824 = vmatpush1.msk.msra.mxu0 %vm236_vm1, %v224_v23  ;;  %3828 = vmatpush1.msk.msra.mxu1 %vm236_vm1, %v226_v24  ;;  %v218_v25 = vpop.permute.xlu1 %217  ;;  %v198_v26 = vpop.permute.xlu0 %197 }
  0xb9   : > { %3829 = vmatmul.mubr.msk.f32.vlgmr.msra.gmra.mxu1 %vm231_vm2, %v196_v17  ;;  %3825 = vmatmul.mubr.msk.f32.vlgmr.msra.gmra.mxu0 %vm231_vm2, %v196_v17  ;;  %v228_v32 = vsel %vm223_vm0, %v216_v15, %v218_v25 }
  0xba   : > { %2878 = vrot.lane.b32.xlu1 %v4342_v6, %s4194_s30  ;;  %323 = vmatprep.mubr.f32.mxu0 %v4181_v0 }
  0xbb   : > { %2499 = vrot.lane.b32.xlu0 %v2465_v27, %s4192_s29  ;;  %400 = vmatprep.mubr.f32.mxu1 %v4181_v0  ;;  %s3733_s29 = scalar_lea.sflag [#allocation4], %s4306_s28 }
  0xbc   : > { %v222_v28 = vpop.permute.xlu1 %221  ;;  %v220_v29 = vpop.permute.xlu0 %219 }
  0xbd   : > { %3826 = vmatmul.mubr.msk.f32.gmra.mxu0 %vm231_vm2, %v198_v26  ;;  %3830 = vmatmul.mubr.msk.f32.gmra.mxu1 %vm231_vm2, %v198_v26  ;;  %v229_v30 = vsel %vm223_vm0, %v218_v25, %v220_v29  ;;  %v230_v31 = vsel %vm223_vm0, %v220_v29, %v222_v28 }
  0xbe   : > { %3835 = vmatprep.subr.msk.mxu1 %vm236_vm1, %v222_v28  ;;  %2882 = vrot.lane.b32.xlu1 %v4338_v5, %s4194_s30 }
  0xbf   : > { %2880 = vrot.lane.b32.xlu0 %v4322_v2, %s4194_s30  ;;  %3831 = vmatprep.subr.msk.mxu0 %vm236_vm1, %v229_v30 }
  0xc0   : > { %3836 = vmatpush1.msk.msra.mxu1 %vm236_vm1, %v230_v31  ;;  %3832 = vmatpush1.msk.msra.mxu0 %vm236_vm1, %v228_v32  ;;  %v916_v33 = vpop.permute.xlu1 %915  ;;  %v914_v34 = vpop.permute.xlu0 %913 }
  0xc1   : > { %471 = vmatprep.mubr.f32.mxu0 %v4181_v0  ;;  %548 = vmatprep.mubr.f32.mxu1 %v4181_v0  ;;  %v931_v39 = vsel %vm929_vm3, %v914_v34, %v916_v33 }
  0xc2   : > { %3833 = vmatmul.mubr.msk.f32.vlgmr.msra.gmra.mxu0 %vm231_vm2, %v196_v17  ;;  %3837 = vmatmul.mubr.msk.f32.vlgmr.msra.gmra.mxu1 %vm231_vm2, %v196_v17 }
  0xc3   : > { %2876 = vrot.lane.b32.xlu1 %v4332_v4, %s4194_s30  ;;  %2884 = vrot.lane.b32.xlu0 %v4319_v1, %s4194_s30 }
  0xc4   : > { %477 = vmatprep.mubr.f32.mxu0 %v4181_v0  ;;  %554 = vmatprep.mubr.f32.mxu1 %v4181_v0  ;;  %v4467_v35 = vpop.permute.xlu1 %919  ;;  %v918_v36 = vpop.permute.xlu0 %917 }
  0xc5   : > { %3839 = vmatprep.subr.msk.mxu0 %vm236_vm1, %v4342_v6  ;;  %3843 = vmatprep.subr.msk.mxu1 %vm236_vm1, %v4338_v5  ;;  %v933_v40 = vsel %vm929_vm3, %v918_v36, %v4467_v35  ;;  %v932_v46 = vsel %vm929_vm3, %v916_v33, %v918_v36 }
  0xc6   : > { %3834 = vmatmul.mubr.msk.f32.gmra.mxu0 %vm231_vm2, %v198_v26  ;;  %3838 = vmatmul.mubr.msk.f32.gmra.mxu1 %vm231_vm2, %v198_v26 }
  0xc7   : > { %2865 = vrot.lane.b32.xlu1 %v4353_v8, %s4195_s22  ;;  %2863 = vrot.lane.b32.xlu0 %v4329_v3, %s4195_s22 }
  0xc8   : > { %3840 = vmatpush1.msk.msra.mxu0 %vm236_vm1, %v4332_v4  ;;  %3844 = vmatpush1.msk.msra.mxu1 %vm236_vm1, %v4322_v2  ;;  %v4481_v37 = vpop.permute.xlu1 %898  ;;  %v912_v38 = vpop.permute.xlu0 %911 }
  0xc9   : > { %645 = vmatprep.mubr.f32.mxu0 %v4181_v0  ;;  %722 = vmatprep.mubr.f32.mxu1 %v4181_v0  ;;  %v930_v47 = vsel %vm929_vm3, %v912_v38, %v914_v34 }
  0xca   : > { %3847 = vmatprep.subr.msk.mxu0 %vm236_vm1, %v4348_v7  ;;  %3851 = vmatprep.subr.msk.mxu1 %vm236_vm1, %v4362_v10 }
  0xcb   : > { %3841 = vmatmul.mubr.msk.f32.vlgmr.msra.gmra.mxu0 %vm231_vm2, %v4329_v3  ;;  %3845 = vmatmul.mubr.msk.f32.vlgmr.msra.gmra.mxu1 %vm231_vm2, %v4329_v3 }
  0xcc   : > { %3848 = vmatpush1.msk.msra.mxu0 %vm236_vm1, %v4319_v1  ;;  %3852 = vmatpush1.msk.msra.mxu1 %vm236_vm1, %v4356_v9  ;;  %v922_v41 = vpop.permute.xlu1 %921  ;;  %v4500_v42 = vpop.permute.xlu0 %900 }
  0xcd   : > { %3855 = vmatprep.subr.msk.mxu0 %vm236_vm1, %v931_v39  ;;  %3859 = vmatprep.subr.msk.mxu1 %vm236_vm1, %v933_v40  ;;  %v934_v54 = vsel %vm929_vm3, %v4467_v35, %v922_v41 }
  0xce   : > { %2888 = vrot.lane.b32.xlu1 %v4356_v9, %s4194_s30  ;;  %2886 = vrot.lane.b32.xlu0 %v4348_v7, %s4194_s30 }
  0xcf   : > { %651 = vmatprep.mubr.f32.mxu0 %v4181_v0  ;;  %728 = vmatprep.mubr.f32.mxu1 %v4181_v0 }
  0xd0   : > { %3842 = vmatmul.mubr.msk.f32.gmra.mxu0 %vm231_vm2, %v4353_v8  ;;  %3846 = vmatmul.mubr.msk.f32.gmra.mxu1 %vm231_vm2, %v4353_v8  ;;  %v926_v44 = vpop.permute.xlu1 %925  ;;  %v924_v45 = vpop.permute.xlu0 %923 }
  0xd1   : > { %799 = vmatprep.mubr.f32.mxu0 %v4181_v0  ;;  %876 = vmatprep.mubr.f32.mxu1 %v4181_v0  ;;  %v935_v48 = vsel %vm929_vm3, %v922_v41, %v924_v45  ;;  %v936_v58 = vsel %vm929_vm3, %v924_v45, %v926_v44 }
  0xd2   : > { %2892 = vrot.lane.b32.xlu1 %v2858_v43, %s4194_s30  ;;  %2890 = vrot.lane.b32.xlu0 %v4362_v10, %s4194_s30  ;;  %s4118_s30 = sshll.u32 %s4199_s16, 4  ;;  %s4119_s30 = int_to_ptr.vmem [resolvable:$false] %s4118_s30 }
  0xd3   : > { %s4120_s22 = scalar_lea.vmem %s4119_s30, 2048  ;;  %p4121_p1 = scmp.lt.s32.totalorder %s3748_s20, %s4119_s30 }
  0xd4   : > { %3849 = vmatmul.mubr.msk.f32.vlgmr.msra.gmra.mxu0 %vm231_vm2, %v4329_v3  ;;  %3853 = vmatmul.mubr.msk.f32.vlgmr.msra.gmra.mxu1 %vm231_vm2, %v4329_v3  ;;  %v1307_v49 = vpop.permute.xlu1 %1306  ;;  %v928_v50 = vpop.permute.xlu0 %927  ;;  %p4122_p3 = scmp.lt.s32.totalorder %s4120_s22, %s4114_s5 }
  0xd5   : > { %3856 = vmatpush1.msk.msra.mxu0 %vm236_vm1, %v930_v47  ;;  %3860 = vmatpush1.msk.msra.mxu1 %vm236_vm1, %v932_v46  ;;  %v937_v51 = vsel %vm929_vm3, %v926_v44, %v928_v50  ;;  %v4198_v50 = vmov 0  }
  0xd6   : > { %3273 = vrot.lane.b32.xlu1 %v4322_v2, %s4196_s4  ;;  %3271 = vrot.lane.b32.xlu0 %v4342_v6, %s4196_s4  ;;  %p4123_p8 = por %p4122_p3, %p4121_p1 }
  0xd7   : > { %3863 = vmatprep.subr.msk.mxu0 %vm236_vm1, %v935_v48  ;;  %805 = vmatprep.mubr.f32.mxu0 %v4181_v0 }
  0xd8   : > { %882 = vmatprep.mubr.f32.mxu1 %v4181_v0  ;;  %3850 = vmatmul.mubr.msk.f32.gmra.mxu0 %vm231_vm2, %v4353_v8  ;;  %v1311_v52 = vpop.permute.xlu1 %1310  ;;  %v1309_v53 = vpop.permute.xlu0 %1308  ;;  %p4124_p10 = pnand %p4123_p8, %p4117_p0 }
  0xd9   : > { %3854 = vmatmul.mubr.msk.f32.gmra.mxu1 %vm231_vm2, %v4353_v8  ;;  %3867 = vmatprep.subr.msk.mxu1 %vm236_vm1, %v937_v51  ;;  %v1324_v55 = vsel %vm1322_vm4, %v1307_v49, %v1309_v53  ;;  %v3640_v51 = vld [vmem:[%s5004_s2] sm:$0xff] }
  0xda   : > { %3277 = vrot.lane.b32.xlu1 %v4319_v1, %s4196_s4  ;;  %3275 = vrot.lane.b32.xlu0 %v4338_v5, %s4196_s4  ;;  %v1325_v1 = vsel %vm1322_vm4, %v1309_v53, %v1311_v52 }
  0xdb   : > { %1022 = vmatprep.mubr.f32.mxu0 %v4181_v0  ;;  %1099 = vmatprep.mubr.f32.mxu1 %v4181_v0 }
  0xdc   : > { %3857 = vmatmul.mubr.msk.f32.vlgmr.msra.gmra.mxu0 %vm231_vm2, %v4481_v37  ;;  %v1305_v56 = vpop.permute.xlu1 %1304  ;;  %v1313_v57 = vpop.permute.xlu0 %1312  ;;  %4049 = vset.pattern.permute.xlu0 %v4198_v50 }
  0xdd   : > { %3861 = vmatmul.mubr.msk.f32.vlgmr.msra.gmra.mxu1 %vm231_vm2, %v4481_v37  ;;  %3864 = vmatpush1.msk.msra.mxu0 %vm236_vm1, %v934_v54  ;;  %v1326_v59 = vsel %vm1322_vm4, %v1311_v52, %v1313_v57  ;;  %v1323_v2 = vsel %vm1322_vm4, %v1305_v56, %v1307_v49 }
  0xde   : > { %3868 = vmatpush1.msk.msra.mxu1 %vm236_vm1, %v936_v58  ;;  %3256 = vrot.lane.b32.xlu1 %v4329_v3, %s4197_s6 }
  0xdf   : > { %3269 = vrot.lane.b32.xlu0 %v4332_v4, %s4196_s4  ;;  %3871 = vmatprep.subr.msk.mxu0 %vm236_vm1, %v1324_v55  ;;  %v3251_v4 = vld [vmem:[%s4310_s8 + $0x20] sm:$0xf]  ;;  %v3641_v55 = vld [vmem:[%s5004_s2 + $0x8] sm:$0xff] }
  0xe0   : > { %1028 = vmatprep.mubr.f32.mxu0 %v4181_v0  ;;  %1105 = vmatprep.mubr.f32.mxu1 %v4181_v0  ;;  %v4565_v60 = vpop.permute.xlu1 %1293  ;;  %v1292_v61 = vpop.permute.xlu0 %1291 }
  0xe1   : > { %3858 = vmatmul.mubr.msk.f32.gmra.mxu0 %vm231_vm2, %v4500_v42  ;;  %3862 = vmatmul.mubr.msk.f32.gmra.mxu1 %vm231_vm2, %v4500_v42 }
  0xe2   : > { %3279 = vrot.lane.b32.xlu1 %v4348_v7, %s4196_s4  ;;  %3875 = vmatprep.subr.msk.mxu1 %vm236_vm1, %v1326_v59 }
  0xe3   : > { %3258 = vrot.lane.b32.xlu0 %v4353_v8, %s4197_s6  ;;  %1176 = vmatprep.mubr.f32.mxu0 %v4181_v0 }
  0xe4   : > { %1253 = vmatprep.mubr.f32.mxu1 %v4181_v0  ;;  %v1317_v62 = vpop.permute.xlu1 %1316  ;;  %v1315_v63 = vpop.permute.xlu0 %1314  ;;  %4048 = vset.pattern.permute.xlu1 %v4198_v50 }
  0xe5   : > { %3865 = vmatmul.mubr.msk.f32.vlgmr.msra.gmra.mxu0 %vm231_vm2, %v4481_v37  ;;  %3869 = vmatmul.mubr.msk.f32.vlgmr.msra.gmra.mxu1 %vm231_vm2, %v4481_v37  ;;  %v1328_v3 = vsel %vm1322_vm4, %v1315_v63, %v1317_v62  ;;  %v1327_v11 = vsel %vm1322_vm4, %v1313_v57, %v1315_v63 }
  0xe6   : > { %3872 = vmatpush1.msk.msra.mxu0 %vm236_vm1, %v1323_v2  ;;  %3876 = vmatpush1.msk.msra.mxu1 %vm236_vm1, %v1325_v1 }
  0xe7   : > { %3283 = vrot.lane.b32.xlu1 %v4362_v10, %s4196_s4  ;;  %3281 = vrot.lane.b32.xlu0 %v4356_v9, %s4196_s4 }
  0xe8   : > { %1182 = vmatprep.mubr.f32.mxu0 %v4181_v0  ;;  %1259 = vmatprep.mubr.f32.mxu1 %v4181_v0  ;;  %v1321_v5 = vpop.permute.xlu1 %1320  ;;  %v1319_v6 = vpop.permute.xlu0 %1318 }
  0xe9   : > { %3866 = vmatmul.mubr.msk.f32.gmra.mxu0 %vm231_vm2, %v4500_v42  ;;  %3870 = vmatmul.mubr.msk.f32.gmra.mxu1 %vm231_vm2, %v4500_v42  ;;  %v1330_v7 = vsel %vm1322_vm4, %v1319_v6, %v1321_v5  ;;  %v1329_v8 = vsel %vm1322_vm4, %v1317_v62, %v1319_v6 }
  0xea   : > { %3879 = vmatprep.subr.msk.mxu0 %vm236_vm1, %v1328_v3  ;;  %1415 = vmatprep.mubr.f32.mxu0 %v4181_v0 }
  0xeb   : > { %3285 = vrot.lane.b32.xlu0 %v3251_v4, %s4196_s4  ;;  %1492 = vmatprep.mubr.f32.mxu1 %v4181_v0 }
  0xec   : > { %3883 = vmatprep.subr.msk.mxu1 %vm236_vm1, %v1330_v7  ;;  %v1702_v9 = vpop.permute.xlu1 %1701  ;;  %v1700_v10 = vpop.permute.xlu0 %1699  ;;  %3649 = vperm.xlu1 %4048, %v3641_v55  }
  0xed   : > { %3873 = vmatmul.mubr.msk.f32.vlgmr.msra.gmra.mxu0 %vm231_vm2, %v1292_v61  ;;  %3877 = vmatmul.mubr.msk.f32.vlgmr.msra.gmra.mxu1 %vm231_vm2, %v1292_v61  ;;  %v1717_v12 = vsel %vm1715_vm5, %v1700_v10, %v1702_v9 }
  0xee   : > { %3880 = vmatpush1.msk.msra.mxu0 %vm236_vm1, %v1327_v11  ;;  %1421 = vmatprep.mubr.f32.mxu0 %v4181_v0 }
  0xef   : > { %1498 = vmatprep.mubr.f32.mxu1 %v4181_v0  ;;  %3884 = vmatpush1.msk.msra.mxu1 %vm236_vm1, %v1329_v8 }
  0xf0   : > { %3887 = vmatprep.subr.msk.mxu0 %vm236_vm1, %v1717_v12  ;;  %v1706_v13 = vpop.permute.xlu1 %1705  ;;  %v1704_v14 = vpop.permute.xlu0 %1703  ;;  %3644 = vperm.xlu0 %4049, %v3640_v51  }
  0xf1   : > { %3874 = vmatmul.mubr.msk.f32.gmra.mxu0 %vm231_vm2, %v4565_v60  ;;  %3878 = vmatmul.mubr.msk.f32.gmra.mxu1 %vm231_vm2, %v4565_v60  ;;  %v1719_v15 = vsel %vm1715_vm5, %v1704_v14, %v1706_v13  ;;  %v1718_v16 = vsel %vm1715_vm5, %v1702_v9, %v1704_v14 }
  0xf2   : > { %1569 = vmatprep.mubr.f32.mxu0 %v4181_v0  ;;  %1646 = vmatprep.mubr.f32.mxu1 %v4181_v0 }
  0xf3   : > { %3891 = vmatprep.subr.msk.mxu1 %vm236_vm1, %v1719_v15 }
  0xf4   : > { %v1685_v17 = vpop.permute.xlu1 %1684  ;;  %v1698_v18 = vpop.permute.xlu0 %1697 }
  0xf5   : > { %3881 = vmatmul.mubr.msk.f32.vlgmr.msra.gmra.mxu0 %vm231_vm2, %v1292_v61  ;;  %3885 = vmatmul.mubr.msk.f32.vlgmr.msra.gmra.mxu1 %vm231_vm2, %v1292_v61  ;;  %v1716_v19 = vsel %vm1715_vm5, %v1698_v18, %v1700_v10 }
  0xf6   : > { %1575 = vmatprep.mubr.f32.mxu0 %v4181_v0  ;;  %1652 = vmatprep.mubr.f32.mxu1 %v4181_v0 }
  0xf7   : > { %3892 = vmatpush1.msk.msra.mxu1 %vm236_vm1, %v1718_v16  ;;  %3888 = vmatpush1.msk.msra.mxu0 %vm236_vm1, %v1716_v19 }
  0xf8   : > { %v1708_v20 = vpop.permute.xlu1 %1707  ;;  %v1687_v21 = vpop.permute.xlu0 %1686 }
  0xf9   : > { %3882 = vmatmul.mubr.msk.f32.gmra.mxu0 %vm231_vm2, %v4565_v60  ;;  %3886 = vmatmul.mubr.msk.f32.gmra.mxu1 %vm231_vm2, %v4565_v60  ;;  %v1720_v25 = vsel %vm1715_vm5, %v1706_v13, %v1708_v20 }
  0xfa   : > { %1808 = vmatprep.mubr.f32.mxu0 %v4181_v0  ;;  %1885 = vmatprep.mubr.f32.mxu1 %v4181_v0 }
  0xfc   : > { %v1712_v22 = vpop.permute.xlu1 %1711  ;;  %v1710_v23 = vpop.permute.xlu0 %1709 }
  0xfd   : > { %3889 = vmatmul.mubr.msk.f32.vlgmr.msra.gmra.mxu0 %vm231_vm2, %v1685_v17  ;;  %3893 = vmatmul.mubr.msk.f32.vlgmr.msra.gmra.mxu1 %vm231_vm2, %v1685_v17  ;;  %v1721_v24 = vsel %vm1715_vm5, %v1708_v20, %v1710_v23  ;;  %v1722_v29 = vsel %vm1715_vm5, %v1710_v23, %v1712_v22 }
  0xfe   : > { %1814 = vmatprep.mubr.f32.mxu0 %v4181_v0  ;;  %1891 = vmatprep.mubr.f32.mxu1 %v4181_v0 }
  0xff   : > { %3895 = vmatprep.subr.msk.mxu0 %vm236_vm1, %v1721_v24 }
 0x100   : > { %3896 = vmatpush1.msk.msra.mxu0 %vm236_vm1, %v1720_v25  ;;  %v2093_v26 = vpop.permute.xlu1 %2092  ;;  %v1714_v27 = vpop.permute.xlu0 %1713 }
 0x101   : > { %3890 = vmatmul.mubr.msk.f32.gmra.mxu0 %vm231_vm2, %v1687_v21  ;;  %3894 = vmatmul.mubr.msk.f32.gmra.mxu1 %vm231_vm2, %v1687_v21  ;;  %v1723_v28 = vsel %vm1715_vm5, %v1712_v22, %v1714_v27 }
 0x102   : > { %1962 = vmatprep.mubr.f32.mxu0 %v4181_v0  ;;  %3899 = vmatprep.subr.msk.mxu1 %vm236_vm1, %v1723_v28 }
 0x103   : > { %3900 = vmatpush1.msk.msra.mxu1 %vm236_vm1, %v1722_v29  ;;  %2039 = vmatprep.mubr.f32.mxu1 %v4181_v0 }
 0x104   : > { %v2097_v30 = vpop.permute.xlu1 %2096  ;;  %v2095_v31 = vpop.permute.xlu0 %2094 }
 0x105   : > { %3897 = vmatmul.mubr.msk.f32.vlgmr.msra.gmra.mxu0 %vm231_vm2, %v1685_v17  ;;  %3901 = vmatmul.mubr.msk.f32.vlgmr.msra.gmra.mxu1 %vm231_vm2, %v1685_v17  ;;  %v2110_v32 = vsel %vm2108_vm6, %v2093_v26, %v2095_v31  ;;  %v2111_v37 = vsel %vm2108_vm6, %v2095_v31, %v2097_v30 }
 0x106   : > { %1968 = vmatprep.mubr.f32.mxu0 %v4181_v0  ;;  %3903 = vmatprep.subr.msk.mxu0 %vm236_vm1, %v2110_v32 }
 0x107   : > { %2045 = vmatprep.mubr.f32.mxu1 %v4181_v0 }
 0x108   : > { %v2091_v33 = vpop.permute.xlu1 %2090  ;;  %v2099_v34 = vpop.permute.xlu0 %2098 }
 0x109   : > { %3898 = vmatmul.mubr.msk.f32.gmra.mxu0 %vm231_vm2, %v1687_v21  ;;  %v2109_v35 = vsel %vm2108_vm6, %v2091_v33, %v2093_v26  ;;  %3902 = vmatmul.mubr.msk.f32.gmra.mxu1 %vm231_vm2, %v1687_v21  ;;  %v2112_v36 = vsel %vm2108_vm6, %v2097_v30, %v2099_v34 }
 0x10a   : > { %3904 = vmatpush1.msk.msra.mxu0 %vm236_vm1, %v2109_v35  ;;  %3907 = vmatprep.subr.msk.mxu1 %vm236_vm1, %v2112_v36 }
 0x10b   : > { %3908 = vmatpush1.msk.msra.mxu1 %vm236_vm1, %v2111_v37  ;;  %2201 = vmatprep.mubr.f32.mxu0 %v4181_v0 }
 0x10c   : > { %v2080_v38 = vpop.permute.xlu1 %2079  ;;  %2278 = vmatprep.mubr.f32.mxu1 %v4181_v0  ;;  %v2078_v39 = vpop.permute.xlu0 %2077 }
 0x10d   : > { %3905 = vmatmul.mubr.msk.f32.vlgmr.msra.gmra.mxu0 %vm231_vm2, %v2078_v39  ;;  %3909 = vmatmul.mubr.msk.f32.vlgmr.msra.gmra.mxu1 %vm231_vm2, %v2078_v39 }
 0x10e   : > { %2207 = vmatprep.mubr.f32.mxu0 %v4181_v0  ;;  %2284 = vmatprep.mubr.f32.mxu1 %v4181_v0 }
 0x110   : > { %v2103_v40 = vpop.permute.xlu1 %2102  ;;  %v2101_v41 = vpop.permute.xlu0 %2100 }
 0x111   : > { %v2113_v42 = vsel %vm2108_vm6, %v2099_v34, %v2101_v41  ;;  %v2114_v43 = vsel %vm2108_vm6, %v2101_v41, %v2103_v40  ;;  %3906 = vmatmul.mubr.msk.f32.gmra.mxu0 %vm231_vm2, %v2080_v38  ;;  %3910 = vmatmul.mubr.msk.f32.gmra.mxu1 %vm231_vm2, %v2080_v38 }
 0x112   : > { %3911 = vmatprep.subr.msk.mxu0 %vm236_vm1, %v2114_v43  ;;  %2355 = vmatprep.mubr.f32.mxu0 %v4181_v0 }
 0x113   : > { %3912 = vmatpush1.msk.msra.mxu0 %vm236_vm1, %v2113_v42  ;;  %2432 = vmatprep.mubr.f32.mxu1 %v4181_v0 }
 0x114   : > { %v2107_v44 = vpop.permute.xlu1 %2106  ;;  %v2105_v45 = vpop.permute.xlu0 %2104 }
 0x115   : > { %v2115_v46 = vsel %vm2108_vm6, %v2103_v40, %v2105_v45  ;;  %v2116_v47 = vsel %vm2108_vm6, %v2105_v45, %v2107_v44  ;;  %3913 = vmatmul.mubr.msk.f32.vlgmr.msra.gmra.mxu0 %vm231_vm2, %v2078_v39 }
 0x116   : > { %3915 = vmatprep.subr.msk.mxu1 %vm236_vm1, %v2116_v47  ;;  %2361 = vmatprep.mubr.f32.mxu0 %v4181_v0 }
 0x117   : > { %3916 = vmatpush1.msk.msra.mxu1 %vm236_vm1, %v2115_v46 }
 0x118   : > { %v2488_v48 = vpop.permute.xlu1 %2487  ;;  %3917 = vmatmul.mubr.msk.f32.vlgmr.msra.gmra.mxu1 %vm231_vm2, %v2078_v39  ;;  %v2486_v49 = vpop.permute.xlu0 %2485 }
 0x119   : > { %v2503_v52 = vsel %vm2501_vm7, %v2486_v49, %v2488_v48  ;;  %3914 = vmatmul.mubr.msk.f32.gmra.mxu0 %vm231_vm2, %v2080_v38  ;;  %2438 = vmatprep.mubr.f32.mxu1 %v4181_v0 }
 0x11a   : > { %3919 = vmatprep.subr.msk.mxu0 %vm236_vm1, %v2503_v52  ;;  %2594 = vmatprep.mubr.f32.mxu0 %v4181_v0 }
 0x11c   : > { %v2492_v53 = vpop.permute.xlu1 %2491  ;;  %3918 = vmatmul.mubr.msk.f32.gmra.mxu1 %vm231_vm2, %v2080_v38  ;;  %v2490_v54 = vpop.permute.xlu0 %2489 }
 0x11d   : > { %v2504_v56 = vsel %vm2501_vm7, %v2488_v48, %v2490_v54  ;;  %v2505_v57 = vsel %vm2501_vm7, %v2490_v54, %v2492_v53  ;;  %2671 = vmatprep.mubr.f32.mxu1 %v4181_v0 }
 0x11e   : > { %3923 = vmatprep.subr.msk.mxu1 %vm236_vm1, %v2505_v57 }
 0x11f   : > { %3924 = vmatpush1.msk.msra.mxu1 %vm236_vm1, %v2504_v56 }
 0x120   : > { %v2471_v58 = vpop.permute.xlu1 %2470  ;;  %v2484_v59 = vpop.permute.xlu0 %2483 }
 0x121   : > { %v2502_v60 = vsel %vm2501_vm7, %v2484_v59, %v2486_v49  ;;  %3925 = vmatmul.mubr.msk.f32.vlgmr.msra.gmra.mxu1 %vm231_vm2, %v2471_v58 }
 0x122   : > { %3920 = vmatpush1.msk.msra.mxu0 %vm236_vm1, %v2502_v60  ;;  %2677 = vmatprep.mubr.f32.mxu1 %v4181_v0 }
 0x123   : > { %3921 = vmatmul.mubr.msk.f32.vlgmr.msra.gmra.mxu0 %vm231_vm2, %v2471_v58 }
 0x124   : > { %v2494_v61 = vpop.permute.xlu1 %2493  ;;  %v2473_v62 = vpop.permute.xlu0 %2472  ;;  %2600 = vmatprep.mubr.f32.mxu0 %v4181_v0 }
 0x125   : > { %3926 = vmatmul.mubr.msk.f32.gmra.mxu1 %vm231_vm2, %v2473_v62  ;;  %v2506_v3 = vsel %vm2501_vm7, %v2492_v53, %v2494_v61 }
 0x126   : > { %2825 = vmatprep.mubr.f32.mxu1 %v4181_v0 }
 0x127   : > { %3922 = vmatmul.mubr.msk.f32.gmra.mxu0 %vm231_vm2, %v2473_v62 }
 0x128   : > { %v2498_v63 = vpop.permute.xlu1 %2497  ;;  %2748 = vmatprep.mubr.f32.mxu0 %v4181_v0 }
 0x129   : > { %v2496_v1 = vpop.permute.xlu0 %2495 }
 0x12a   : > { %v2507_v2 = vsel %vm2501_vm7, %v2494_v61, %v2496_v1  ;;  %v2508_v7 = vsel %vm2501_vm7, %v2496_v1, %v2498_v63 }
 0x12b   : > { %3927 = vmatprep.subr.msk.mxu0 %vm236_vm1, %v2507_v2 }
 0x12c   : > { %3928 = vmatpush1.msk.msra.mxu0 %vm236_vm1, %v2506_v3  ;;  %v2879_v4 = vpop.permute.xlu1 %2878 }
 0x12d   : > { %3929 = vmatmul.mubr.msk.f32.vlgmr.msra.gmra.mxu0 %vm231_vm2, %v2471_v58  ;;  %v2500_v5 = vpop.permute.xlu0 %2499 }
 0x12e   : > { %v2509_v6 = vsel %vm2501_vm7, %v2498_v63, %v2500_v5  ;;  %2754 = vmatprep.mubr.f32.mxu0 %v4181_v0 }
 0x12f   : > { %3931 = vmatprep.subr.msk.mxu1 %vm236_vm1, %v2509_v6 }
 0x130   : > { %3932 = vmatpush1.msk.msra.mxu1 %vm236_vm1, %v2508_v7  ;;  %v2883_v8 = vpop.permute.xlu1 %2882 }
 0x131   : > { %3930 = vmatmul.mubr.msk.f32.gmra.mxu0 %vm231_vm2, %v2473_v62  ;;  %3933 = vmatmul.mubr.msk.f32.vlgmr.msra.gmra.mxu1 %vm231_vm2, %v2471_v58  ;;  %v2881_v9 = vpop.permute.xlu0 %2880 }
 0x132   : > { %v2896_v10 = vsel %vm2894_vm8, %v2879_v4, %v2881_v9  ;;  %2831 = vmatprep.mubr.f32.mxu1 %v4181_v0  ;;  %2987 = vmatprep.mubr.f32.mxu0 %v4181_v0  ;;  %v2897_v15 = vsel %vm2894_vm8, %v2881_v9, %v2883_v8 }
 0x133   : > { %3935 = vmatprep.subr.msk.mxu0 %vm236_vm1, %v2896_v10 }
 0x135   : > { %v2877_v11 = vpop.permute.xlu1 %2876  ;;  %3934 = vmatmul.mubr.msk.f32.gmra.mxu1 %vm231_vm2, %v2473_v62  ;;  %v2885_v12 = vpop.permute.xlu0 %2884 }
 0x136   : > { %v2895_v13 = vsel %vm2894_vm8, %v2877_v11, %v2879_v4  ;;  %v2898_v14 = vsel %vm2894_vm8, %v2883_v8, %v2885_v12  ;;  %3064 = vmatprep.mubr.f32.mxu1 %v4181_v0 }
 0x137   : > { %3936 = vmatpush1.msk.msra.mxu0 %vm236_vm1, %v2895_v13  ;;  %3939 = vmatprep.subr.msk.mxu1 %vm236_vm1, %v2898_v14 }
 0x138   : > { %3940 = vmatpush1.msk.msra.mxu1 %vm236_vm1, %v2897_v15 }
 0x139   : > { %v2864_v16 = vpop.permute.xlu0 %2863  ;;  %v2866_v17 = vpop.permute.xlu1 %2865 }
 0x13a   : > { %3937 = vmatmul.mubr.msk.f32.vlgmr.msra.gmra.mxu0 %vm231_vm2, %v2864_v16  ;;  %3941 = vmatmul.mubr.msk.f32.vlgmr.msra.gmra.mxu1 %vm231_vm2, %v2864_v16 }
 0x13b   : > { %2993 = vmatprep.mubr.f32.mxu0 %v4181_v0  ;;  %3070 = vmatprep.mubr.f32.mxu1 %v4181_v0 }
 0x13e   : > { %3938 = vmatmul.mubr.msk.f32.gmra.mxu0 %vm231_vm2, %v2866_v17  ;;  %3942 = vmatmul.mubr.msk.f32.gmra.mxu1 %vm231_vm2, %v2866_v17 }
 0x13f   : > { %3141 = vmatprep.mubr.f32.mxu0 %v4181_v0  ;;  %3218 = vmatprep.mubr.f32.mxu1 %v4181_v0 }
 0x140   : > { %v2889_v18 = vpop.permute.xlu1 %2888  ;;  %v2887_v19 = vpop.permute.xlu0 %2886 }
 0x141   : > { %v2899_v20 = vsel %vm2894_vm8, %v2885_v12, %v2887_v19  ;;  %v2900_v21 = vsel %vm2894_vm8, %v2887_v19, %v2889_v18 }
 0x142   : > { %3943 = vmatprep.subr.msk.mxu0 %vm236_vm1, %v2900_v21 }
 0x143   : > { %3944 = vmatpush1.msk.msra.mxu0 %vm236_vm1, %v2899_v20 }
 0x144   : > { %v2893_v22 = vpop.permute.xlu1 %2892  ;;  %v2891_v23 = vpop.permute.xlu0 %2890  ;;  %3945 = vmatmul.mubr.msk.f32.vlgmr.msra.gmra.mxu0 %vm231_vm2, %v2864_v16 }
 0x145   : > { %v2901_v24 = vsel %vm2894_vm8, %v2889_v18, %v2891_v23  ;;  %v2902_v25 = vsel %vm2894_vm8, %v2891_v23, %v2893_v22  ;;  %3147 = vmatprep.mubr.f32.mxu0 %v4181_v0 }
 0x146   : > { %3947 = vmatprep.subr.msk.mxu1 %vm236_vm1, %v2902_v25 }
 0x147   : > { %3948 = vmatpush1.msk.msra.mxu1 %vm236_vm1, %v2901_v24 }
 0x148   : > { %v3274_v26 = vpop.permute.xlu1 %3273  ;;  %3949 = vmatmul.mubr.msk.f32.vlgmr.msra.gmra.mxu1 %vm231_vm2, %v2864_v16  ;;  %v3272_v27 = vpop.permute.xlu0 %3271  ;;  %3946 = vmatmul.mubr.msk.f32.gmra.mxu0 %vm231_vm2, %v2866_v17 }
 0x149   : > { %v3289_v28 = vsel %vm3287_vm9, %v3272_v27, %v3274_v26  ;;  %3224 = vmatprep.mubr.f32.mxu1 %v4181_v0  ;;  %3380 = vmatprep.mubr.f32.mxu0 %v4181_v0 }
 0x14a   : > { %3951 = vmatprep.subr.msk.mxu0 %vm236_vm1, %v3289_v28 }
 0x14c   : > { %v3278_v29 = vpop.permute.xlu1 %3277  ;;  %3950 = vmatmul.mubr.msk.f32.gmra.mxu1 %vm231_vm2, %v2866_v17  ;;  %v3276_v30 = vpop.permute.xlu0 %3275 }
 0x14d   : > { %v3290_v31 = vsel %vm3287_vm9, %v3274_v26, %v3276_v30  ;;  %v3291_v32 = vsel %vm3287_vm9, %v3276_v30, %v3278_v29  ;;  %3457 = vmatprep.mubr.f32.mxu1 %v4181_v0 }
 0x14e   : > { %3955 = vmatprep.subr.msk.mxu1 %vm236_vm1, %v3291_v32 }
 0x14f   : > { %3956 = vmatpush1.msk.msra.mxu1 %vm236_vm1, %v3290_v31 }
 0x150   : > { %v3257_v33 = vpop.permute.xlu1 %3256 }
 0x151   : > { %v3270_v34 = vpop.permute.xlu0 %3269  ;;  %3957 = vmatmul.mubr.msk.f32.vlgmr.msra.gmra.mxu1 %vm231_vm2, %v3257_v33 }
 0x152   : > { %v3288_v35 = vsel %vm3287_vm9, %v3270_v34, %v3272_v27  ;;  %3463 = vmatprep.mubr.f32.mxu1 %v4181_v0 }
 0x153   : > { %3952 = vmatpush1.msk.msra.mxu0 %vm236_vm1, %v3288_v35 }
 0x154   : > { %3953 = vmatmul.mubr.msk.f32.vlgmr.msra.gmra.mxu0 %vm231_vm2, %v3257_v33  ;;  %v3280_v37 = vpop.permute.xlu1 %3279 }
 0x155   : > { %v3259_v36 = vpop.permute.xlu0 %3258  ;;  %3386 = vmatprep.mubr.f32.mxu0 %v4181_v0  ;;  %v3292_v40 = vsel %vm3287_vm9, %v3278_v29, %v3280_v37 }
 0x156   : > { %3958 = vmatmul.mubr.msk.f32.gmra.mxu1 %vm231_vm2, %v3259_v36 }
 0x157   : > { %3611 = vmatprep.mubr.f32.mxu1 %v4181_v0 }
 0x158   : > { %3954 = vmatmul.mubr.msk.f32.gmra.mxu0 %vm231_vm2, %v3259_v36 }
 0x159   : > { %v3282_v38 = vpop.permute.xlu0 %3281  ;;  %3534 = vmatprep.mubr.f32.mxu0 %v4181_v0  ;;  %v3284_v41 = vpop.permute.xlu1 %3283 }
 0x15a   : > { %v3293_v39 = vsel %vm3287_vm9, %v3280_v37, %v3282_v38  ;;  %v3294_v44 = vsel %vm3287_vm9, %v3282_v38, %v3284_v41 }
 0x15b   : > { %3959 = vmatprep.subr.msk.mxu0 %vm236_vm1, %v3293_v39 }
 0x15c   : > { %3960 = vmatpush1.msk.msra.mxu0 %vm236_vm1, %v3292_v40 }
 0x15d   : > { %3961 = vmatmul.mubr.msk.f32.vlgmr.msra.gmra.mxu0 %vm231_vm2, %v3257_v33  ;;  %v3286_v42 = vpop.permute.xlu0 %3285 }
 0x15e   : > { %v3295_v43 = vsel %vm3287_vm9, %v3284_v41, %v3286_v42  ;;  %3540 = vmatprep.mubr.f32.mxu0 %v4181_v0 }
 0x15f   : > { %3963 = vmatprep.subr.msk.mxu1 %vm236_vm1, %v3295_v43 }
 0x160   : > { %3964 = vmatpush1.msk.msra.mxu1 %vm236_vm1, %v3294_v44 }
 0x161   : > { %3962 = vmatmul.mubr.msk.f32.gmra.mxu0 %vm231_vm2, %v3259_v36  ;;  %3965 = vmatmul.mubr.msk.f32.vlgmr.msra.gmra.mxu1 %vm231_vm2, %v3257_v33 }
 0x162   : > { %3617 = vmatprep.mubr.f32.mxu1 %v4181_v0 }
 0x165   : > { %3966 = vmatmul.mubr.msk.f32.gmra.mxu1 %vm231_vm2, %v3259_v36 }
 0x179   : > { %v319_v45 = vpop.f32.mrf.mxu0  ;;  %v396_v46 = vpop.f32.mrf.mxu1 }
 0x17b   : > { %v321_v47 = vpop.f32.mrf.mxu0  ;;  %v398_v48 = vpop.f32.mrf.mxu1 }
 0x17d   : > { %v325_v49 = vpop.f32.mrf.mxu0  ;;  %v402_v50 = vpop.f32.mrf.mxu1 }
 0x17f   : > { %v327_v51 = vpop.f32.mrf.mxu0  ;;  %v404_v52 = vpop.f32.mrf.mxu1 }
 0x182   : > { %v473_v53 = vpop.f32.mrf.mxu0  ;;  %v550_v54 = vpop.f32.mrf.mxu1 }
 0x184   : > { %v475_v55 = vpop.f32.mrf.mxu0  ;;  %v552_v56 = vpop.f32.mrf.mxu1 }
 0x186   : > { %v479_v57 = vpop.f32.mrf.mxu0  ;;  %v556_v58 = vpop.f32.mrf.mxu1 }
 0x188   : > { %v481_v59 = vpop.f32.mrf.mxu0  ;;  %v558_v60 = vpop.f32.mrf.mxu1 }
 0x18b   : > { %v647_v61 = vpop.f32.mrf.mxu0  ;;  %v724_v0 = vpop.f32.mrf.mxu1 }
 0x18c   : > { %v648_v62 = vadd.f32 %v647_v61, %v319_v45  ;;  %v725_v63 = vadd.f32 %v724_v0, %v396_v46 }
 0x18d   : > { %v649_v1 = vpop.f32.mrf.mxu0  ;;  %v726_v2 = vpop.f32.mrf.mxu1 }
 0x18e   : > { %v650_v3 = vadd.f32 %v649_v1, %v321_v47  ;;  %v727_v4 = vadd.f32 %v726_v2, %v398_v48 }
 0x190   : > { %v653_v5 = vpop.f32.mrf.mxu0  ;;  %v730_v6 = vpop.f32.mrf.mxu1 }
 0x191   : > { %v654_v7 = vadd.f32 %v653_v5, %v325_v49  ;;  %v731_v8 = vadd.f32 %v730_v6, %v402_v50 }
 0x192   : > { %v655_v9 = vpop.f32.mrf.mxu0  ;;  %v732_v10 = vpop.f32.mrf.mxu1 }
 0x193   : > { %v656_v11 = vadd.f32 %v655_v9, %v327_v51  ;;  %v733_v12 = vadd.f32 %v732_v10, %v404_v52 }
 0x194   : > { %v801_v13 = vpop.f32.mrf.mxu0  ;;  %v878_v14 = vpop.f32.mrf.mxu1 }
 0x195   : > { %v802_v15 = vadd.f32 %v801_v13, %v473_v53  ;;  %v879_v16 = vadd.f32 %v878_v14, %v550_v54 }
 0x196   : > { %v803_v17 = vpop.f32.mrf.mxu0  ;;  %v880_v18 = vpop.f32.mrf.mxu1 }
 0x197   : > { %v804_v19 = vadd.f32 %v803_v17, %v475_v55  ;;  %v881_v20 = vadd.f32 %v880_v18, %v552_v56 }
 0x198   : > { %v807_v21 = vpop.f32.mrf.mxu0 }
 0x199   : > { %v808_v22 = vadd.f32 %v807_v21, %v479_v57  ;;  %v884_v23 = vpop.f32.mrf.mxu1 }
 0x19a   : > { %v885_v24 = vadd.f32 %v884_v23, %v556_v58  ;;  %v809_v25 = vpop.f32.mrf.mxu0 }
 0x19b   : > { %v810_v26 = vadd.f32 %v809_v25, %v481_v59  ;;  %v886_v27 = vpop.f32.mrf.mxu1 }
 0x19c   : > { %v887_v28 = vadd.f32 %v886_v27, %v558_v60  ;;  %v1024_v29 = vpop.f32.mrf.mxu0 }
 0x19d   : > { %v1266_v30 = vadd.f32 %v1024_v29, %v648_v62  ;;  %v1101_v31 = vpop.f32.mrf.mxu1 }
 0x19e   : > { %v1268_v32 = vadd.f32 %v1101_v31, %v725_v63  ;;  %v1026_v33 = vpop.f32.mrf.mxu0 }
 0x19f   : > { %v1267_v34 = vadd.f32 %v1026_v33, %v650_v3  ;;  %v1103_v35 = vpop.f32.mrf.mxu1 }
 0x1a0   : > { %v1269_v36 = vadd.f32 %v1103_v35, %v727_v4 }
 0x1a1   : > { %v1030_v37 = vpop.f32.mrf.mxu0  ;;  %v1107_v38 = vpop.f32.mrf.mxu1 }
 0x1a2   : > { %v1274_v39 = vadd.f32 %v1030_v37, %v654_v7  ;;  %v1276_v40 = vadd.f32 %v1107_v38, %v731_v8 }
 0x1a3   : > { %v1032_v41 = vpop.f32.mrf.mxu0  ;;  %v1109_v42 = vpop.f32.mrf.mxu1 }
 0x1a4   : > { %v1275_v43 = vadd.f32 %v1032_v41, %v656_v11  ;;  %v1277_v44 = vadd.f32 %v1109_v42, %v733_v12 }
 0x1a5   : > { %v1178_v45 = vpop.f32.mrf.mxu0  ;;  %v1255_v46 = vpop.f32.mrf.mxu1 }
 0x1a6   : > { %v1270_v47 = vadd.f32 %v1178_v45, %v802_v15  ;;  %v1272_v48 = vadd.f32 %v1255_v46, %v879_v16 }
 0x1a7   : > { %v1180_v49 = vpop.f32.mrf.mxu0  ;;  %v1257_v50 = vpop.f32.mrf.mxu1 }
 0x1a8   : > { %v1271_v51 = vadd.f32 %v1180_v49, %v804_v19  ;;  %v1273_v52 = vadd.f32 %v1257_v50, %v881_v20 }
 0x1a9   : > { %v1184_v53 = vpop.f32.mrf.mxu0  ;;  %v1261_v54 = vpop.f32.mrf.mxu1 }
 0x1aa   : > { %v1278_v55 = vadd.f32 %v1184_v53, %v808_v22  ;;  %v1280_v56 = vadd.f32 %v1261_v54, %v885_v24 }
 0x1ab   : > { %v1186_v57 = vpop.f32.mrf.mxu0  ;;  %v1263_v58 = vpop.f32.mrf.mxu1 }
 0x1ac   : > { %v1279_v59 = vadd.f32 %v1186_v57, %v810_v26  ;;  %v1281_v60 = vadd.f32 %v1263_v58, %v887_v28 }
 0x1ad   : > { %v1417_v61 = vpop.f32.mrf.mxu0  ;;  %v1494_v0 = vpop.f32.mrf.mxu1 }
 0x1ae   : > { %v1659_v62 = vadd.f32 %v1417_v61, %v1266_v30  ;;  %v1661_v63 = vadd.f32 %v1494_v0, %v1268_v32 }
 0x1af   : > { %v1419_v1 = vpop.f32.mrf.mxu0  ;;  %v1496_v2 = vpop.f32.mrf.mxu1 }
 0x1b0   : > { %v1660_v3 = vadd.f32 %v1419_v1, %v1267_v34  ;;  %v1662_v4 = vadd.f32 %v1496_v2, %v1269_v36 }
 0x1b1   : > { %v1423_v5 = vpop.f32.mrf.mxu0  ;;  %v1500_v6 = vpop.f32.mrf.mxu1 }
 0x1b2   : > { %v4791_v7 = vadd.f32 %v1423_v5, %v1274_v39  ;;  %v4793_v8 = vadd.f32 %v1500_v6, %v1276_v40 }
 0x1b3   : > { %v1425_v9 = vpop.f32.mrf.mxu0  ;;  %v1502_v10 = vpop.f32.mrf.mxu1 }
 0x1b4   : > { %v4795_v11 = vadd.f32 %v1425_v9, %v1275_v43  ;;  %v4797_v12 = vadd.f32 %v1502_v10, %v1277_v44 }
 0x1b5   : > { %v1571_v13 = vpop.f32.mrf.mxu0  ;;  %v1648_v14 = vpop.f32.mrf.mxu1 }
 0x1b6   : > { %v1663_v15 = vadd.f32 %v1571_v13, %v1270_v47  ;;  %v1665_v16 = vadd.f32 %v1648_v14, %v1272_v48 }
 0x1b7   : > { %v1573_v17 = vpop.f32.mrf.mxu0  ;;  %v1650_v18 = vpop.f32.mrf.mxu1 }
 0x1b8   : > { %v1664_v19 = vadd.f32 %v1573_v17, %v1271_v51  ;;  %v1666_v20 = vadd.f32 %v1650_v18, %v1273_v52 }
 0x1b9   : > { %v1577_v21 = vpop.f32.mrf.mxu0  ;;  %v1654_v22 = vpop.f32.mrf.mxu1 }
 0x1ba   : > { %v4799_v23 = vadd.f32 %v1577_v21, %v1278_v55  ;;  %v4801_v24 = vadd.f32 %v1654_v22, %v1280_v56 }
 0x1bb   : > { %v1579_v25 = vpop.f32.mrf.mxu0  ;;  %v1656_v26 = vpop.f32.mrf.mxu1 }
 0x1bc   : > { %v4803_v27 = vadd.f32 %v1579_v25, %v1279_v59  ;;  %v4805_v28 = vadd.f32 %v1656_v26, %v1281_v60 }
 0x1bd   : > { %v1810_v29 = vpop.f32.mrf.mxu0  ;;  %v1887_v30 = vpop.f32.mrf.mxu1 }
 0x1be   : > { %v2052_v31 = vadd.f32 %v1810_v29, %v1659_v62  ;;  %v2054_v32 = vadd.f32 %v1887_v30, %v1661_v63 }
 0x1bf   : > { %v1812_v33 = vpop.f32.mrf.mxu0  ;;  %v1889_v34 = vpop.f32.mrf.mxu1 }
 0x1c0   : > { %v2053_v35 = vadd.f32 %v1812_v33, %v1660_v3  ;;  %v2055_v36 = vadd.f32 %v1889_v34, %v1662_v4 }
 0x1c1   : > { %v4807_v37 = vpop.f32.mrf.mxu0  ;;  %v4809_v38 = vpop.f32.mrf.mxu1 }
 0x1c3   : > { %v4811_v39 = vpop.f32.mrf.mxu0  ;;  %v4813_v40 = vpop.f32.mrf.mxu1 }
 0x1c5   : > { %v1964_v41 = vpop.f32.mrf.mxu0  ;;  %v2041_v42 = vpop.f32.mrf.mxu1 }
 0x1c6   : > { %v2056_v43 = vadd.f32 %v1964_v41, %v1663_v15  ;;  %v2058_v44 = vadd.f32 %v2041_v42, %v1665_v16 }
 0x1c7   : > { %v1966_v45 = vpop.f32.mrf.mxu0  ;;  %v2043_v46 = vpop.f32.mrf.mxu1 }
 0x1c8   : > { %v2057_v47 = vadd.f32 %v1966_v45, %v1664_v19  ;;  %v2059_v48 = vadd.f32 %v2043_v46, %v1666_v20 }
 0x1c9   : > { %v4815_v49 = vpop.f32.mrf.mxu0  ;;  %v4817_v50 = vpop.f32.mrf.mxu1 }
 0x1cb   : > { %v4819_v51 = vpop.f32.mrf.mxu0  ;;  %v4821_v52 = vpop.f32.mrf.mxu1 }
 0x1cd   : > { %v2203_v53 = vpop.f32.mrf.mxu0  ;;  %v2280_v54 = vpop.f32.mrf.mxu1 }
 0x1ce   : > { %v2445_v55 = vadd.f32 %v2203_v53, %v2052_v31  ;;  %v2447_v56 = vadd.f32 %v2280_v54, %v2054_v32 }
 0x1cf   : > { %v2205_v57 = vpop.f32.mrf.mxu0  ;;  %v2282_v58 = vpop.f32.mrf.mxu1 }
 0x1d0   : > { %v2446_v59 = vadd.f32 %v2205_v57, %v2053_v35  ;;  %v2448_v60 = vadd.f32 %v2282_v58, %v2055_v36 }
 0x1d1   : > { %v2209_v61 = vpop.f32.mrf.mxu0  ;;  %v2286_v0 = vpop.f32.mrf.mxu1 }
 0x1d3   : > { %v4823_v62 = vpop.f32.mrf.mxu0  ;;  %v2288_v1 = vpop.f32.mrf.mxu1 }
 0x1d5   : > { %v2357_v63 = vpop.f32.mrf.mxu0 }
 0x1d6   : > { %v2449_v2 = vadd.f32 %v2357_v63, %v2056_v43 }
 0x1d7   : > { %v2359_v3 = vpop.f32.mrf.mxu0 }
 0x1d8   : > { %v2450_v4 = vadd.f32 %v2359_v3, %v2057_v47  ;;  %v2434_v5 = vpop.f32.mrf.mxu1 }
 0x1d9   : > { %v2451_v6 = vadd.f32 %v2434_v5, %v2058_v44  ;;  %v4827_v14 = vpop.f32.mrf.mxu0 }
 0x1da   : > { %v2436_v9 = vpop.f32.mrf.mxu1 }
 0x1db   : > { %v2452_v10 = vadd.f32 %v2436_v9, %v2059_v48  ;;  %v4831_v16 = vpop.f32.mrf.mxu0 }
 0x1dc   : > { %v4825_v13 = vpop.f32.mrf.mxu1 }
 0x1de   : > { %v4829_v15 = vpop.f32.mrf.mxu1 }
 0x1e1   : > { %v2673_v17 = vpop.f32.mrf.mxu1 }
 0x1e2   : > { %v4833_v18 = vadd.f32 %v2673_v17, %v2447_v56  ;;  %v2060_v17 = vadd.f32 %v4807_v37, %v4791_v7 }
 0x1e3   : > { %v2596_v19 = vpop.f32.mrf.mxu0  ;;  %v2675_v20 = vpop.f32.mrf.mxu1 }
 0x1e4   : > { %v4835_v21 = vadd.f32 %v2596_v19, %v2445_v55  ;;  %v4837_v22 = vadd.f32 %v2675_v20, %v2448_v60  ;;  %v2063_v19 = vadd.f32 %v4813_v40, %v4797_v12  ;;  %v4892_v12 = vpop.permute.xlu1 %3649 }
 0x1e5   : > { %v2598_v25 = vpop.f32.mrf.mxu0  ;;  %v2679_v31 = vpop.f32.mrf.mxu1 }
 0x1e6   : > { %v4839_v26 = vadd.f32 %v2598_v25, %v2446_v59 }
 0x1e7   : > { %v2602_v29 = vpop.f32.mrf.mxu0  ;;  %v2681_v34 = vpop.f32.mrf.mxu1 }
 0x1e9   : > { %v2604_v30 = vpop.f32.mrf.mxu0 }
 0x1ed   : > { %v2750_v32 = vpop.f32.mrf.mxu0 }
 0x1ee   : > { %v4841_v33 = vadd.f32 %v2750_v32, %v2449_v2 }
 0x1ef   : > { %v2752_v35 = vpop.f32.mrf.mxu0 }
 0x1f0   : > { %v4843_v36 = vadd.f32 %v2752_v35, %v2450_v4  ;;  %v2061_v35 = vadd.f32 %v4811_v39, %v4795_v11 }
 0x1f1   : > { %v2827_v41 = vpop.f32.mrf.mxu1  ;;  %v4847_v44 = vpop.f32.mrf.mxu0 }
 0x1f2   : > { %v4845_v42 = vadd.f32 %v2827_v41, %v2451_v6  ;;  %v2453_v41 = vadd.f32 %v2209_v61, %v2060_v17 }
 0x1f3   : > { %v2829_v43 = vpop.f32.mrf.mxu1  ;;  %v4855_v48 = vpop.f32.mrf.mxu0 }
 0x1f4   : > { %5015 = vst [vmem:[#allocation8_spill] sm:$0xff] %v4845_v42  ;;  %v4849_v45 = vadd.f32 %v2829_v43, %v2452_v10  ;;  %v2062_v10 = vadd.f32 %v4809_v38, %v4793_v8  ;;  %v2456_v43 = vadd.f32 %v2288_v1, %v2063_v19  ;;  %v2454_v8 = vadd.f32 %v4823_v62, %v2061_v35 }
 0x1f5   : > { %v4851_v46 = vpop.f32.mrf.mxu1  ;;  %v2846_v7 = vadd.f32 %v2602_v29, %v2453_v41  ;;  %v2064_v62 = vadd.f32 %v4815_v49, %v4799_v23  ;;  %v2066_v23 = vadd.f32 %v4817_v50, %v4801_v24 }
 0x1f6   : > { %5016 = vst [vmem:[#allocation9_spill] sm:$0xff] %v4849_v45  ;;  %v2455_v20 = vadd.f32 %v2286_v0, %v2062_v10  ;;  %v2849_v37 = vadd.f32 %v2681_v34, %v2456_v43  ;;  %v2847_v10 = vadd.f32 %v2604_v30, %v2454_v8  ;;  %v2067_v8 = vadd.f32 %v4821_v52, %v4805_v28 }
 0x1f7   : > { %v4853_v47 = vpop.f32.mrf.mxu1 }
 0x1f8   : > { %v2460_v50 = vadd.f32 %v4829_v15, %v2067_v8 }
 0x1fa   : > { %v4857_v53 = vpop.f32.mrf.mxu0  ;;  %v4859_v54 = vpop.f32.mrf.mxu1 }
 0x1fc   : > { %v4861_v55 = vpop.f32.mrf.mxu0  ;;  %v4863_v56 = vpop.f32.mrf.mxu1 }
 0x1fe   : > { %v2995_v57 = vpop.f32.mrf.mxu0  ;;  %v3072_v58 = vpop.f32.mrf.mxu1 }
 0x1ff   : > { %v3239_v42 = vadd.f32 %v2995_v57, %v2846_v7  ;;  %v2065_v57 = vadd.f32 %v4819_v51, %v4803_v27 }
 0x200   : > { %v2997_v59 = vpop.f32.mrf.mxu0  ;;  %v3074_v60 = vpop.f32.mrf.mxu1 }
 0x201   : > { %v3242_v11 = vadd.f32 %v3074_v60, %v2849_v37  ;;  %v2457_v60 = vadd.f32 %v4827_v14, %v2064_v62  ;;  %v2458_v49 = vadd.f32 %v4831_v16, %v2065_v57  ;;  %v2459_v14 = vadd.f32 %v4825_v13, %v2066_v23 }
 0x202   : > { %v3233_v57 = vadd.f32 %v4859_v54, %v4833_v18 }
 0x203   : > { %v2850_v43 = vadd.f32 %v4847_v44, %v2457_v60  ;;  %v2851_v7 = vadd.f32 %v4855_v48, %v2458_v49  ;;  %v2852_v16 = vadd.f32 %v4851_v46, %v2459_v14 }
 0x204   : > { %v4865_v63 = vpop.f32.mrf.mxu0 }
 0x206   : > { %v4869_v3 = vpop.f32.mrf.mxu0 }
 0x208   : > { %v4867_v2 = vpop.f32.mrf.mxu1  ;;  %v3149_v6 = vpop.f32.mrf.mxu0 }
 0x209   : > { %5017 = vst [vmem:[#allocation10_spill] sm:$0xff] %v4867_v2  ;;  %v3243_v37 = vadd.f32 %v3149_v6, %v2850_v43  ;;  %v3232_v43 = vadd.f32 %v4861_v55, %v4839_v26 }
 0x20a   : > { %v4871_v4 = vpop.f32.mrf.mxu1  ;;  %v3151_v32 = vpop.f32.mrf.mxu0 }
 0x20b   : > { %5018 = vst [vmem:[#allocation11_spill] sm:$0xff] %v4871_v4  ;;  %v2848_v4 = vadd.f32 %v2679_v31, %v2455_v20  ;;  %v3240_v31 = vadd.f32 %v2997_v59, %v2847_v10  ;;  %v3244_v44 = vadd.f32 %v3151_v32, %v2851_v7  ;;  %v2853_v10 = vadd.f32 %v4853_v47, %v2460_v50 }
 0x20c   : > { %v4873_v5 = vpop.f32.mrf.mxu1 }
 0x20d   : > { %v3241_v38 = vadd.f32 %v3072_v58, %v2848_v4  ;;  %v3245_v13 = vadd.f32 %v4873_v5, %v2852_v16 }
 0x20e   : > { %v4875_v9 = vpop.f32.mrf.mxu1 }
 0x211   : > { %v4883_v25 = vpop.f32.mrf.mxu1 }
 0x213   : > { %v4887_v45 = vpop.f32.mrf.mxu1 }
 0x214   : > { %v4889_v2 = vpop.f32.mrf.mxu0 }
 0x216   : > { %v4894_v40 = vpop.f32.mrf.mxu0  ;;  %v3465_v0 = vpop.f32.mrf.mxu1 }
 0x217   : > { %v3634_v39 = vadd.f32 %v3465_v0, %v3241_v38 }
 0x218   : > { %v3388_v61 = vpop.f32.mrf.mxu0  ;;  %v3467_v1 = vpop.f32.mrf.mxu1 }
 0x219   : > { %v3662_v17 = vadd.f32 %v4892_v12, %v3634_v39  ;;  %v3632_v19 = vadd.f32 %v3388_v61, %v3239_v42  ;;  %v3635_v20 = vadd.f32 %v3467_v1, %v3242_v11  ;;  %v3246_v39 = vadd.f32 %v4875_v9, %v2853_v10  ;;  %v5019_v10 = vld [vmem:[#allocation8_spill] sm:$0xff] }
 0x21a   : > { %v3390_v29 = vpop.f32.mrf.mxu0 }
 0x21b   : > { %v3969_v34 = vmul.f32 -1.442695, %v3662_v17  ;;  %v3660_v58 = vadd.f32 %v4892_v12, %v3632_v19  ;;  %v3663_v4 = vadd.f32 %v4892_v12, %v3635_v20  ;;  %v3633_v30 = vadd.f32 %v3390_v29, %v3240_v31 }
 0x21d   : > { %4054 = vpow2.f32 %v3969_v34  ;;  %v3967_v59 = vmul.f32 -1.442695, %v3660_v58  ;;  %v3970_v35 = vmul.f32 -1.442695, %v3663_v4  ;;  %v3661_v42 = vadd.f32 %v4892_v12, %v3633_v30  ;;  %v4905_v41 = vpop.f32.mrf.mxu0 }
 0x21f   : > { %4056 = vpow2.f32 %v3967_v59  ;;  %v3968_v27 = vmul.f32 -1.442695, %v3661_v42  ;;  %v4913_v51 = vpop.f32.mrf.mxu0  ;;  %v3626_v59 = vadd.f32 %v4883_v25, %v3233_v57  ;;  %v3645_v42 = vpop.permute.xlu0 %3644 }
 0x220   : > { %4058 = vpow2.f32 %v3970_v35  ;;  %v3234_v35 = vadd.f32 %v4863_v56, %v4837_v22 }
 0x221   : > { %4060 = vpow2.f32 %v3968_v27  ;;  %v3542_v38 = vpop.f32.mrf.mxu0  ;;  %v4917_v24 = vpop.f32.mrf.mxu1 }
 0x222   : > { %v3636_v28 = vadd.f32 %v3542_v38, %v3243_v37  ;;  %v3627_v18 = vadd.f32 %v4887_v45, %v3234_v35 }
 0x223   : > { %v3544_v52 = vpop.f32.mrf.mxu0  ;;  %v4921_v0 = vpop.f32.mrf.mxu1 }
 0x224   : > { %v3664_v48 = vadd.f32 %v4892_v12, %v3636_v28  ;;  %v3637_v6 = vadd.f32 %v3544_v52, %v3244_v44  ;;  %v3655_v38 = vadd.f32 %v3645_v42, %v3627_v18  ;;  %v3236_v28 = vadd.f32 %v4869_v3, %v4843_v36 }
 0x225   : > { %v3619_v11 = vpop.f32.mrf.mxu1 }
 0x226   : > { %v3971_v61 = vmul.f32 -1.442695, %v3664_v48  ;;  %v3665_v15 = vadd.f32 %v4892_v12, %v3637_v6  ;;  %v3638_v1 = vadd.f32 %v3619_v11, %v3245_v13  ;;  %v5020_v13 = vld [vmem:[#allocation10_spill] sm:$0xff]  ;;  %v5022_v6 = vld [vmem:[#allocation11_spill] sm:$0xff] }
 0x227   : > { %v3621_v46 = vpop.f32.mrf.mxu1  ;;  %v3237_v48 = vadd.f32 %v5020_v13, %v5019_v10 }
 0x228   : > { %4062 = vpow2.f32 %v3971_v61  ;;  %v3972_v32 = vmul.f32 -1.442695, %v3665_v15  ;;  %v3666_v31 = vadd.f32 %v4892_v12, %v3638_v1  ;;  %v3639_v17 = vadd.f32 %v3621_v46, %v3246_v39 }
 0x229   : > { %v3630_v61 = vadd.f32 %v4917_v24, %v3237_v48 }
 0x22a   : > { %v4055_v19 = vpop.eup %4054  ;;  %4064 = vpow2.f32 %v3972_v32  ;;  %v3973_v47 = vmul.f32 -1.442695, %v3666_v31  ;;  %v3667_v5 = vadd.f32 %v4892_v12, %v3639_v17  ;;  %v3231_v12 = vadd.f32 %v4857_v53, %v4835_v21 }
 0x22b   : > { %v3694_v20 = vadd.f32 1.0, %v4055_v19  ;;  %v3654_v21 = vadd.f32 %v3645_v42, %v3626_v59  ;;  %v3625_v53 = vadd.f32 %v4894_v40, %v3232_v43  ;;  %v3235_v40 = vadd.f32 %v4865_v63, %v4841_v33  ;;  %v5021_v63 = vld [vmem:[#allocation9_spill] sm:$0xff] }
 0x22c   : > { %v4057_v62 = vpop.eup %4056  ;;  %4066 = vpow2.f32 %v3973_v47  ;;  %v3974_v29 = vmul.f32 -1.442695, %v3667_v5  ;;  %v3624_v8 = vadd.f32 %v4889_v2, %v3231_v12  ;;  %v3629_v33 = vadd.f32 %v4913_v51, %v3236_v28 }
 0x22d   : > { %v4059_v9 = vpop.eup %4058  ;;  %4068 = vrcp.f32 %v3694_v20  ;;  %v3692_v34 = vadd.f32 1.0, %v4057_v62  ;;  %v3653_v2 = vadd.f32 %v3645_v42, %v3625_v53  ;;  %v3628_v52 = vadd.f32 %v4905_v41, %v3235_v40 }
 0x22e   : > { %v4061_v58 = vpop.eup %4060  ;;  %v3695_v4 = vadd.f32 1.0, %v4059_v9  ;;  %4070 = vpow2.f32 %v3974_v29  ;;  %v3652_v14 = vadd.f32 %v3645_v42, %v3624_v8  ;;  %v3238_v11 = vadd.f32 %v5022_v6, %v5021_v63 }
 0x22f   : > { %4072 = vrcp.f32 %v3692_v34  ;;  %v3693_v30 = vadd.f32 1.0, %v4061_v58  ;;  %v3656_v39 = vadd.f32 %v3645_v42, %v3628_v52  ;;  %v3657_v3 = vadd.f32 %v3645_v42, %v3629_v33 }
 0x230   : > { %4074 = vrcp.f32 %v3695_v4  ;;  %v3631_v41 = vadd.f32 %v4921_v0, %v3238_v11  ;;  %v3658_v46 = vadd.f32 %v3645_v42, %v3630_v61 }
 0x231   : > { %4076 = vrcp.f32 %v3693_v30 }
 0x232   : > { %v3659_v31 = vadd.f32 %v3645_v42, %v3631_v41 }
 0x235   : > { %v4063_v60 = vpop.eup %4062 }
 0x236   : > { %v3696_v23 = vadd.f32 1.0, %v4063_v60 }
 0x237   : > { %v4065_v49 = vpop.eup %4064 }
 0x238   : > { %4078 = vrcp.f32 %v3696_v23  ;;  %v3697_v54 = vadd.f32 1.0, %v4065_v49 }
 0x239   : > { %v4067_v27 = vpop.eup %4066 }
 0x23a   : > { %v4069_v25 = vpop.eup %4068  ;;  %4080 = vrcp.f32 %v3697_v54  ;;  %v3698_v22 = vadd.f32 1.0, %v4067_v27 }
 0x23b   : > { %v4071_v56 = vpop.eup %4070  ;;  %v3718_v7 = vmul.f32 %v4069_v25, %v3654_v21 }
 0x23c   : > { %v4073_v37 = vpop.eup %4072  ;;  %4082 = vrcp.f32 %v3698_v22  ;;  %v3699_v26 = vadd.f32 1.0, %v4071_v56 }
 0x23d   : > { %v4075_v55 = vpop.eup %4074  ;;  %v3716_v50 = vmul.f32 %v4073_v37, %v3652_v14  ;;  %3726 = vst [vmem:[%s4943_s17 + $0x10] sm:$0xff] %v3718_v7 }
 0x23e   : > { %v4077_v45 = vpop.eup %4076  ;;  %v3719_v16 = vmul.f32 %v4075_v55, %v3655_v38  ;;  %4084 = vrcp.f32 %v3699_v26 }
 0x23f   : > { %3724 = vst [vmem:[%s4943_s17] sm:$0xff] %v3716_v50  ;;  %v3717_v44 = vmul.f32 %v4077_v45, %v3653_v2 }
 0x240   : > { %3727 = vst [vmem:[%s4943_s17 + $0x18] sm:$0xff] %v3719_v16 }
 0x241   : > { %3725 = vst [vmem:[%s4943_s17 + $0x8] sm:$0xff] %v3717_v44 }
 0x245   : > { %v4079_v36 = vpop.eup %4078 }
 0x246   : > { %v3720_v15 = vmul.f32 %v4079_v36, %v3656_v39 }
 0x247   : > { %v4081_v1 = vpop.eup %4080 }
 0x248   : > { %3728 = vst [vmem:[%s4943_s17 + $0x20] sm:$0xff] %v3720_v15  ;;  %v3721_v32 = vmul.f32 %v4081_v1, %v3657_v3 }
 0x249   : > { %v4083_v51 = vpop.eup %4082 }
 0x24a   : > { %3729 = vst [vmem:[%s4943_s17 + $0x28] sm:$0xff] %v3721_v32  ;;  %v3722_v17 = vmul.f32 %v4083_v51, %v3658_v46 }
 0x24b   : > { %v4085_v24 = vpop.eup %4084 }
 0x24c   : > { %3730 = vst [vmem:[%s4943_s17 + $0x30] sm:$0xff] %v3722_v17  ;;  %v3723_v19 = vmul.f32 %v4085_v24, %v3659_v31 }
 0x24e   : > { %3731 = vst.msk [vmem:[%s4943_s17 + $0x38] sm:$0xff] %vm223_vm0, %v3723_v19 }
 0x24f   : > { %4127 = shalt.err (!%p4124_p10)
}
 0x250   : > { %s4128_s4 = scalar_lea.hbm %s3745_s27, 1024  ;;  %s4132_s8 = scalar_lea.hbm %s5005_s3, 2048 }
 0x251   : > { %p4129_p2 = scmp.ne.s32.totalorder %s3745_s27, %s4128_s4  ;;  %p4133_p7 = scmp.lt.s32.totalorder %s3745_s27, %s5005_s3 }
 0x252   : > { %p4134_p5 = scmp.lt.s32.totalorder %s4132_s8, %s4128_s4 }
 0x253   : > { %p4130_p4 = pnand %p4129_p2, %p5023_p12 }
 0x254   : > { %p4135_p6 = por %p4134_p5, %p4133_p7 }
 0x255   : > { %p4131_p9 = pneg %p4130_p4 }
 0x257   : > { %p4136_p11 = pnand %p4135_p6, %p4131_p9 }
 0x259   : > { %4139 = shalt.err (!%p4136_p11)
}
 0x25a   : > { %3986 = dma.vmem_to_hbm [thread:$0]  (%p5023_p12), %s3748_s20, 1024, %s3745_s27, %s3733_s29  }
 0x25b PF: > { %s3759_s10 = sand.u32 1, %s4166_s12   ;;  %p5024_p13 = scmp.ne.s32.totalorder %s5010_s24, 0 }
 0x25c   : > { %p5025_p0 = scmp.ge.s32.totalorder %s4178_s15, 2  ;;  %s3760_s11 = scalar_lea.sflag [#allocation4], %s3759_s10 }
 0x25e   : > { %p3993_p1 = pnand %p5025_p0, %p5024_p13 }
 0x260   : > { %p3994_p3 = pneg %p3993_p1 }
 0x262   : > { %4161 = dma.done.wait (%p3994_p3), %s3760_s11, 1024  }
 0x263   : > { %4163 = vsyncadd (%p3994_p3), %s3760_s11, 4294966272  ;;  %p16_p8 = scmp.ge.s32.totalorder %s4245_s18, 4   ;;  %s5026_s12 = smov %s4170_s13 }
 0x264   : > { %s5027_s13 = smov %s4174_s14  ;;  %s5028_s14 = smov %s4257_s21 }
 0x265   : > { %s5029_s15 = smov %s4245_s18  ;;  %18 = sbr.rel (!%p16_p8) target bundleno = 5 (0x5), region = 77 }
 0x26a   :  { %3765 = vsyncpa [#allocation3], 1 }
 0x26b   :  { %3767 = vsyncpa [#allocation3 + $0x1], 1 }
 0x26c   :  { %3768 = vsyncpa [#allocation4], 1 }
 0x26d   :  { %3770 = vsyncpa [#allocation4 + $0x1], 1 }

</bundles_post_ra>
